<compile_context>
chip_gen: v5e
topology: v5e:2x2
jax: 0.10.0
libtpu: 0.0.40
codegen_flags: <defaults>
</compile_context>

<pallas_src>
import functools

import jax
import jax.numpy as jnp
import numpy as np
from jax import lax
from jax.experimental import pallas as pl
from jax.experimental.pallas import tpu as pltpu


def _fused_lstm_fc_kernel(*refs, hidden_size, num_layers, seq_len, batch_pad,
                          matmul_dtype):
    """Whole model in one gridless kernel invocation.

    refs layout:
      refs[0]                      : x2d    (T*Bp, input_size), rows in (t, b) order
      refs[1 + 3*l + 0]            : w_ih_t layer l -- (I, 4H) for l==0,
                                                       (4H, 4H) zero-row-padded for l>0
      refs[1 + 3*l + 1]            : w_hh_t layer l -- (4H, 4H) zero-row-padded
      refs[1 + 3*l + 2]            : bias   layer l -- (1, 4H)  (b_ih + b_hh)
      refs[1 + 3*num_layers + 0]   : fc_w_t         -- (4H, OUT_PAD) zero-padded
      refs[1 + 3*num_layers + 1]   : fc_b           -- (1, OUT_PAD)
      refs[1 + 3*num_layers + 2]   : out            -- (Bp, OUT_PAD)
    """
    H = hidden_size
    G = 4 * H
    T = seq_len
    Bp = batch_pad

    x_ref = refs[0]
    layer_refs = refs[1:1 + 3 * num_layers]
    wfc_ref, bfc_ref, out_ref = refs[1 + 3 * num_layers:]

    def mm(a, b):
        # Optional bf16 MXU inputs on v6e/v7x via matmul_dtype; accumulation is f32.
        return jnp.dot(a.astype(matmul_dtype), b.astype(matmul_dtype),
                       preferred_element_type=jnp.float32)

    # Lane mask, hoisted out of all loops: tanh on the 'g' lanes [2H, 3H),
    # sigmoid everywhere else.
    lane = lax.broadcasted_iota(jnp.int32, (Bp, G), 1)
    g_lanes = (lane >= 2 * H) & (lane < 3 * H)

    def cell(gates, c_prev):
        # Full-vreg activations: 2 EUP pushes + 1 select instead of 4 narrow ones.
        act = jnp.where(g_lanes, jnp.tanh(gates), jax.nn.sigmoid(gates))
        # Align f/g/o onto lanes [0, H) with XLU rotates; lanes >= H of c/h become
        # bounded don't-cares that the zero-padded weight rows kill exactly.
        act_f = pltpu.roll(act, shift=3 * H, axis=1)   # f -> lanes [0, H)
        act_g = pltpu.roll(act, shift=2 * H, axis=1)   # g -> lanes [0, H)
        act_o = pltpu.roll(act, shift=1 * H, axis=1)   # o -> lanes [0, H)
        c_new = act_f * c_prev + act * act_g           # lanes [0,H): f*c + i*g
        h_new = act_o * jnp.tanh(c_new)                # lanes [0,H): o*tanh(c)
        return h_new, c_new

    # Hoisted, non-recurrent layer-0 input projection for all timesteps at once.
    gx0 = mm(x_ref[...], layer_refs[0][...]) + layer_refs[2][...]   # (T*Bp, 4H)

    whh = [layer_refs[3 * l + 1][...] for l in range(num_layers)]
    wih = [None] + [layer_refs[3 * l + 0][...] for l in range(1, num_layers)]
    bsl = [None] + [layer_refs[3 * l + 2][...] for l in range(1, num_layers)]

    # Carried state, full lane width; only lanes [0, H) are meaningful.
    h = [jnp.zeros((Bp, G), jnp.float32) for _ in range(num_layers)]
    c = [jnp.zeros((Bp, G), jnp.float32) for _ in range(num_layers)]

    # Wavefront schedule: at diagonal step d, layer l processes t = d - l, so all
    # layers' recurrent matmuls + gate chains are independent within a step.
    for d in range(T + num_layers - 1):
        h_in = list(h)   # snapshot: every layer reads step-(d-1) outputs
        for l in range(num_layers):
            t = d - l
            if not (0 <= t < T):
                continue
            if l == 0:
                gates = gx0[t * Bp:(t + 1) * Bp, :] + mm(h_in[0], whh[0])
            else:
                gates = mm(h_in[l - 1], wih[l]) + bsl[l] + mm(h_in[l], whh[l])
            h[l], c[l] = cell(gates, c[l])

    # Final Linear on the top layer's last hidden state; lane-dense (Bp, OUT_PAD)
    # store, real rows/cols are sliced off in the wrapper.
    out_ref[...] = (mm(h[num_layers - 1], wfc_ref[...])
                    + bfc_ref[...]).astype(out_ref.dtype)


def _full_block_spec(shape):
    zeros = (0,) * len(shape)
    return pl.BlockSpec(tuple(shape), lambda: zeros)


def lstm_model_forward(params, x, hidden_size, num_layers,
                       matmul_dtype=jnp.float32):
    """x: (B, T, input_size) -> (B, 3). Matches the PyTorch module's forward."""
    B, T, I = x.shape
    H = hidden_size
    G = 4 * H
    Bp = ((B + 7) // 8) * 8                      # sublane-padded batch (free)
    out_size = params["fc_w_t"].shape[1]
    out_pad = ((out_size + 127) // 128) * 128    # lane-dense output block

    # Time-major, batch-padded, flattened to 2D: the hoisted layer-0 projection is
    # one plain 2D matmul and every per-step row slice is sublane-aligned.
    x_tbi = jnp.transpose(x, (1, 0, 2)).astype(jnp.float32)       # (T, B, I)
    x_pad = jnp.pad(x_tbi, ((0, 0), (0, Bp - B), (0, 0)))          # (T, Bp, I)
    x2d = x_pad.reshape(T * Bp, I)                                 # (T*Bp, I)

    args = [x2d]
    for l in range(num_layers):
        p = params["layers"][l]
        w_ih = p["w_ih_t"].astype(jnp.float32)
        if l > 0:
            # Zero rows >= H so the full-width carried h contributes nothing
            # from its don't-care lanes.
            w_ih = jnp.pad(w_ih, ((0, G - H), (0, 0)))
        w_hh = jnp.pad(p["w_hh_t"].astype(jnp.float32), ((0, G - H), (0, 0)))
        args += [w_ih, w_hh, p["bias"].astype(jnp.float32)]
    fc_w = jnp.pad(params["fc_w_t"].astype(jnp.float32),
                   ((0, G - H), (0, out_pad - out_size)))
    fc_b = jnp.pad(params["fc_b"].astype(jnp.float32),
                   ((0, 0), (0, out_pad - out_size)))
    args += [fc_w, fc_b]

    # Advisory cost estimate so XLA schedules around the fused call sensibly.
    flops = (2 * T * Bp * I * G
             + T * (2 * num_layers - 1) * 2 * Bp * G * G
             + 2 * Bp * G * out_pad)
    transcendentals = T * num_layers * 3 * Bp * G
    bytes_accessed = (sum(int(a.size) * a.dtype.itemsize for a in args)
                      + Bp * out_pad * 4)

    kernel = functools.partial(
        _fused_lstm_fc_kernel, hidden_size=H, num_layers=num_layers,
        seq_len=T, batch_pad=Bp, matmul_dtype=matmul_dtype)

    # TODO(synk): when Bp >= 16, add a leading batch grid axis with
    # dimension_semantics=("parallel",) so v7x's 2 TensorCores each take half the
    # batch, and chunk T (emit_pipeline / T grid axis with h,c in scratch) once the
    # hoisted (T*Bp, 4H) projection stops fitting comfortably in v7x's 64 MiB VMEM.
    out_full = pl.pallas_call(
        kernel,
        out_shape=jax.ShapeDtypeStruct((Bp, out_pad), jnp.float32),
        in_specs=[_full_block_spec(a.shape) for a in args],
        out_specs=_full_block_spec((Bp, out_pad)),
        cost_estimate=pl.CostEstimate(flops=flops,
                                      transcendentals=transcendentals,
                                      bytes_accessed=bytes_accessed),
    )(*args)
    return out_full[:B, :out_size]


def init_params(key, input_size, hidden_size, num_layers, out_size=3):
    """PyTorch-style uniform(-1/sqrt(H), 1/sqrt(H)) init, deterministic."""
    params = {"layers": []}
    bound = 1.0 / float(np.sqrt(hidden_size))
    for layer in range(num_layers):
        in_sz = input_size if layer == 0 else hidden_size
        key, k1, k2, k3, k4 = jax.random.split(key, 5)
        w_ih = jax.random.uniform(k1, (4 * hidden_size, in_sz),
                                  jnp.float32, -bound, bound)
        w_hh = jax.random.uniform(k2, (4 * hidden_size, hidden_size),
                                  jnp.float32, -bound, bound)
        b_ih = jax.random.uniform(k3, (4 * hidden_size,),
                                  jnp.float32, -bound, bound)
        b_hh = jax.random.uniform(k4, (4 * hidden_size,),
                                  jnp.float32, -bound, bound)
        params["layers"].append({
            "w_ih_t": w_ih.T,                               # (in, 4H)
            "w_hh_t": w_hh.T,                               # (H, 4H)
            "bias": (b_ih + b_hh)[None, :],                 # (1, 4H)
        })
    key, k5, k6 = jax.random.split(key, 3)
    fc_bound = 1.0 / float(np.sqrt(hidden_size))
    w_fc = jax.random.uniform(k5, (out_size, hidden_size),
                              jnp.float32, -fc_bound, fc_bound)
    b_fc = jax.random.uniform(k6, (out_size,),
                              jnp.float32, -fc_bound, fc_bound)
    params["fc_w_t"] = w_fc.T            # (H, 3)
    params["fc_b"] = b_fc[None, :]       # (1, 3)
    return params


def _reference_forward(params, x, hidden_size, num_layers):
    """Plain-JAX reference (lax.scan) for correctness check."""
    B = x.shape[0]
    h_seq = jnp.transpose(x, (1, 0, 2))  # (T, B, I)
    for layer in range(num_layers):
        p = params["layers"][layer]

        def step(carry, x_t, p=p):
            h, c = carry
            gates = x_t @ p["w_ih_t"] + h @ p["w_hh_t"] + p["bias"]
            i, f, g, o = jnp.split(gates, 4, axis=-1)
            i, f, o = jax.nn.sigmoid(i), jax.nn.sigmoid(f), jax.nn.sigmoid(o)
            g = jnp.tanh(g)
            c = f * c + i * g
            h = o * jnp.tanh(c)
            return (h, c), h

        h0 = jnp.zeros((B, hidden_size), jnp.float32)
        c0 = jnp.zeros((B, hidden_size), jnp.float32)
        _, h_seq = lax.scan(step, (h0, c0), h_seq)
    return h_seq[-1] @ params["fc_w_t"] + params["fc_b"]


if __name__ == "__main__":
    B, T, INPUT_SIZE, HIDDEN_SIZE, NUM_LAYERS = 2, 8, 4, 32, 2

    key = jax.random.PRNGKey(0)
    key, xkey = jax.random.split(key)
    x = jax.random.normal(xkey, (B, T, INPUT_SIZE), jnp.float32)

    params = init_params(key, INPUT_SIZE, HIDDEN_SIZE, NUM_LAYERS)

    out = lstm_model_forward(params, x, HIDDEN_SIZE, NUM_LAYERS)
    out = jax.block_until_ready(out)

    ref = _reference_forward(params, x, HIDDEN_SIZE, NUM_LAYERS)
    assert out.shape == (B, 3)
    assert np.allclose(np.asarray(out), np.asarray(ref), atol=1e-5, rtol=1e-5)

    print("KERNEL_OK")
</pallas_src>

<mosaic_0001>
module attributes {stable_mosaic.version = 11 : i64} {
  func.func @_fused_lstm_fc_kernel(%arg0: memref<64x4xf32, #tpu.memory_space<vmem>>, %arg1: memref<4x128xf32, #tpu.memory_space<vmem>>, %arg2: memref<128x128xf32, #tpu.memory_space<vmem>>, %arg3: memref<1x128xf32, #tpu.memory_space<vmem>>, %arg4: memref<128x128xf32, #tpu.memory_space<vmem>>, %arg5: memref<128x128xf32, #tpu.memory_space<vmem>>, %arg6: memref<1x128xf32, #tpu.memory_space<vmem>>, %arg7: memref<128x128xf32, #tpu.memory_space<vmem>>, %arg8: memref<1x128xf32, #tpu.memory_space<vmem>>, %arg9: memref<8x128xf32, #tpu.memory_space<vmem>>) attributes {dimension_semantics = [], scalar_prefetch = 0 : i64, scratch_operands = 0 : i64, tpu.core_type = #tpu.core_type<tc>} {
    %0 = tpu.iota {dimensions = array<i32: 1>} : vector<8x128xi32>
    %c64_i32 = arith.constant 64 : i32
    %1 = vector.broadcast %c64_i32 : i32 to vector<8x128xi32>
    %2 = arith.cmpi sge, %0, %1 : vector<8x128xi32>
    %c96_i32 = arith.constant 96 : i32
    %3 = vector.broadcast %c96_i32 : i32 to vector<8x128xi32>
    %4 = arith.cmpi slt, %0, %3 : vector<8x128xi32>
    %5 = arith.andi %2, %4 : vector<8x128xi1>
    %c0 = arith.constant 0 : index
    %c0_0 = arith.constant 0 : index
    %6 = vector.load %arg0[%c0, %c0_0] : memref<64x4xf32, #tpu.memory_space<vmem>>, vector<64x4xf32>
    %c0_1 = arith.constant 0 : index
    %c0_2 = arith.constant 0 : index
    %7 = vector.load %arg1[%c0_1, %c0_2] : memref<4x128xf32, #tpu.memory_space<vmem>>, vector<4x128xf32>
    %cst = arith.constant dense<0.000000e+00> : vector<64x128xf32>
    %8 = tpu.matmul %6, %7, %cst {dimension_numbers = #tpu.dot_dimension_numbers<[1], [0], [0], [1], [0, 0, 1, 1], [], []>} : vector<64x4xf32>, vector<4x128xf32>, vector<64x128xf32> -> vector<64x128xf32>
    %c0_3 = arith.constant 0 : index
    %c0_4 = arith.constant 0 : index
    %9 = vector.load %arg3[%c0_3, %c0_4] : memref<1x128xf32, #tpu.memory_space<vmem>>, vector<1x128xf32>
    %10 = vector.broadcast %9 : vector<1x128xf32> to vector<64x128xf32>
    %11 = arith.addf %8, %10 : vector<64x128xf32>
    %c0_5 = arith.constant 0 : index
    %c0_6 = arith.constant 0 : index
    %12 = vector.load %arg2[%c0_5, %c0_6] : memref<128x128xf32, #tpu.memory_space<vmem>>, vector<128x128xf32>
    %c0_7 = arith.constant 0 : index
    %c0_8 = arith.constant 0 : index
    %13 = vector.load %arg5[%c0_7, %c0_8] : memref<128x128xf32, #tpu.memory_space<vmem>>, vector<128x128xf32>
    %c0_9 = arith.constant 0 : index
    %c0_10 = arith.constant 0 : index
    %14 = vector.load %arg4[%c0_9, %c0_10] : memref<128x128xf32, #tpu.memory_space<vmem>>, vector<128x128xf32>
    %c0_11 = arith.constant 0 : index
    %c0_12 = arith.constant 0 : index
    %15 = vector.load %arg6[%c0_11, %c0_12] : memref<1x128xf32, #tpu.memory_space<vmem>>, vector<1x128xf32>
    %cst_13 = arith.constant 0.000000e+00 : f32
    %16 = vector.broadcast %cst_13 : f32 to vector<8x128xf32>
    %cst_14 = arith.constant 0.000000e+00 : f32
    %17 = vector.broadcast %cst_14 : f32 to vector<8x128xf32>
    %cst_15 = arith.constant 0.000000e+00 : f32
    %18 = vector.broadcast %cst_15 : f32 to vector<8x128xf32>
    %cst_16 = arith.constant 0.000000e+00 : f32
    %19 = vector.broadcast %cst_16 : f32 to vector<8x128xf32>
    %20 = vector.extract_strided_slice %11 {offsets = [0, 0], sizes = [8, 128], strides = [1, 1]} : vector<64x128xf32> to vector<8x128xf32>
    %cst_17 = arith.constant dense<0.000000e+00> : vector<8x128xf32>
    %21 = tpu.matmul %16, %12, %cst_17 {dimension_numbers = #tpu.dot_dimension_numbers<[1], [0], [0], [1], [0, 0, 1, 1], [], []>} : vector<8x128xf32>, vector<128x128xf32>, vector<8x128xf32> -> vector<8x128xf32>
    %22 = arith.addf %20, %21 : vector<8x128xf32>
    %23 = math.tanh %22 : vector<8x128xf32>
    %24 = arith.negf %22 : vector<8x128xf32>
    %25 = math.exp %24 : vector<8x128xf32>
    %cst_18 = arith.constant 1.000000e+00 : f32
    %26 = vector.broadcast %cst_18 : f32 to vector<8x128xf32>
    %27 = arith.addf %26, %25 : vector<8x128xf32>
    %28 = arith.divf %26, %27 : vector<8x128xf32>
    %29 = arith.select %5, %23, %28 : vector<8x128xi1>, vector<8x128xf32>
    %c96_i32_19 = arith.constant 96 : i32
    %30 = tpu.dynamic_rotate %29 by %c96_i32_19 dim 1 : vector<8x128xf32>, i32 -> vector<8x128xf32>
    %c64_i32_20 = arith.constant 64 : i32
    %31 = tpu.dynamic_rotate %29 by %c64_i32_20 dim 1 : vector<8x128xf32>, i32 -> vector<8x128xf32>
    %c32_i32 = arith.constant 32 : i32
    %32 = tpu.dynamic_rotate %29 by %c32_i32 dim 1 : vector<8x128xf32>, i32 -> vector<8x128xf32>
    %33 = arith.mulf %30, %18 : vector<8x128xf32>
    %34 = arith.mulf %29, %31 : vector<8x128xf32>
    %35 = arith.addf %33, %34 : vector<8x128xf32>
    %36 = math.tanh %35 : vector<8x128xf32>
    %37 = arith.mulf %32, %36 : vector<8x128xf32>
    %38 = vector.extract_strided_slice %11 {offsets = [8, 0], sizes = [8, 128], strides = [1, 1]} : vector<64x128xf32> to vector<8x128xf32>
    %cst_21 = arith.constant dense<0.000000e+00> : vector<8x128xf32>
    %39 = tpu.matmul %37, %12, %cst_21 {dimension_numbers = #tpu.dot_dimension_numbers<[1], [0], [0], [1], [0, 0, 1, 1], [], []>} : vector<8x128xf32>, vector<128x128xf32>, vector<8x128xf32> -> vector<8x128xf32>
    %40 = arith.addf %38, %39 : vector<8x128xf32>
    %41 = math.tanh %40 : vector<8x128xf32>
    %42 = arith.negf %40 : vector<8x128xf32>
    %43 = math.exp %42 : vector<8x128xf32>
    %cst_22 = arith.constant 1.000000e+00 : f32
    %44 = vector.broadcast %cst_22 : f32 to vector<8x128xf32>
    %45 = arith.addf %44, %43 : vector<8x128xf32>
    %46 = arith.divf %44, %45 : vector<8x128xf32>
    %47 = arith.select %5, %41, %46 : vector<8x128xi1>, vector<8x128xf32>
    %c96_i32_23 = arith.constant 96 : i32
    %48 = tpu.dynamic_rotate %47 by %c96_i32_23 dim 1 : vector<8x128xf32>, i32 -> vector<8x128xf32>
    %c64_i32_24 = arith.constant 64 : i32
    %49 = tpu.dynamic_rotate %47 by %c64_i32_24 dim 1 : vector<8x128xf32>, i32 -> vector<8x128xf32>
    %c32_i32_25 = arith.constant 32 : i32
    %50 = tpu.dynamic_rotate %47 by %c32_i32_25 dim 1 : vector<8x128xf32>, i32 -> vector<8x128xf32>
    %51 = arith.mulf %48, %35 : vector<8x128xf32>
    %52 = arith.mulf %47, %49 : vector<8x128xf32>
    %53 = arith.addf %51, %52 : vector<8x128xf32>
    %54 = math.tanh %53 : vector<8x128xf32>
    %55 = arith.mulf %50, %54 : vector<8x128xf32>
    %cst_26 = arith.constant dense<0.000000e+00> : vector<8x128xf32>
    %56 = tpu.matmul %37, %14, %cst_26 {dimension_numbers = #tpu.dot_dimension_numbers<[1], [0], [0], [1], [0, 0, 1, 1], [], []>} : vector<8x128xf32>, vector<128x128xf32>, vector<8x128xf32> -> vector<8x128xf32>
    %57 = vector.broadcast %15 : vector<1x128xf32> to vector<8x128xf32>
    %58 = arith.addf %56, %57 : vector<8x128xf32>
    %cst_27 = arith.constant dense<0.000000e+00> : vector<8x128xf32>
    %59 = tpu.matmul %17, %13, %cst_27 {dimension_numbers = #tpu.dot_dimension_numbers<[1], [0], [0], [1], [0, 0, 1, 1], [], []>} : vector<8x128xf32>, vector<128x128xf32>, vector<8x128xf32> -> vector<8x128xf32>
    %60 = arith.addf %58, %59 : vector<8x128xf32>
    %61 = math.tanh %60 : vector<8x128xf32>
    %62 = arith.negf %60 : vector<8x128xf32>
    %63 = math.exp %62 : vector<8x128xf32>
    %cst_28 = arith.constant 1.000000e+00 : f32
    %64 = vector.broadcast %cst_28 : f32 to vector<8x128xf32>
    %65 = arith.addf %64, %63 : vector<8x128xf32>
    %66 = arith.divf %64, %65 : vector<8x128xf32>
    %67 = arith.select %5, %61, %66 : vector<8x128xi1>, vector<8x128xf32>
    %c96_i32_29 = arith.constant 96 : i32
    %68 = tpu.dynamic_rotate %67 by %c96_i32_29 dim 1 : vector<8x128xf32>, i32 -> vector<8x128xf32>
    %c64_i32_30 = arith.constant 64 : i32
    %69 = tpu.dynamic_rotate %67 by %c64_i32_30 dim 1 : vector<8x128xf32>, i32 -> vector<8x128xf32>
    %c32_i32_31 = arith.constant 32 : i32
    %70 = tpu.dynamic_rotate %67 by %c32_i32_31 dim 1 : vector<8x128xf32>, i32 -> vector<8x128xf32>
    %71 = arith.mulf %68, %19 : vector<8x128xf32>
    %72 = arith.mulf %67, %69 : vector<8x128xf32>
    %73 = arith.addf %71, %72 : vector<8x128xf32>
    %74 = math.tanh %73 : vector<8x128xf32>
    %75 = arith.mulf %70, %74 : vector<8x128xf32>
    %76 = vector.extract_strided_slice %11 {offsets = [16, 0], sizes = [8, 128], strides = [1, 1]} : vector<64x128xf32> to vector<8x128xf32>
    %cst_32 = arith.constant dense<0.000000e+00> : vector<8x128xf32>
    %77 = tpu.matmul %55, %12, %cst_32 {dimension_numbers = #tpu.dot_dimension_numbers<[1], [0], [0], [1], [0, 0, 1, 1], [], []>} : vector<8x128xf32>, vector<128x128xf32>, vector<8x128xf32> -> vector<8x128xf32>
    %78 = arith.addf %76, %77 : vector<8x128xf32>
    %79 = math.tanh %78 : vector<8x128xf32>
    %80 = arith.negf %78 : vector<8x128xf32>
    %81 = math.exp %80 : vector<8x128xf32>
    %cst_33 = arith.constant 1.000000e+00 : f32
    %82 = vector.broadcast %cst_33 : f32 to vector<8x128xf32>
    %83 = arith.addf %82, %81 : vector<8x128xf32>
    %84 = arith.divf %82, %83 : vector<8x128xf32>
    %85 = arith.select %5, %79, %84 : vector<8x128xi1>, vector<8x128xf32>
    %c96_i32_34 = arith.constant 96 : i32
    %86 = tpu.dynamic_rotate %85 by %c96_i32_34 dim 1 : vector<8x128xf32>, i32 -> vector<8x128xf32>
    %c64_i32_35 = arith.constant 64 : i32
    %87 = tpu.dynamic_rotate %85 by %c64_i32_35 dim 1 : vector<8x128xf32>, i32 -> vector<8x128xf32>
    %c32_i32_36 = arith.constant 32 : i32
    %88 = tpu.dynamic_rotate %85 by %c32_i32_36 dim 1 : vector<8x128xf32>, i32 -> vector<8x128xf32>
    %89 = arith.mulf %86, %53 : vector<8x128xf32>
    %90 = arith.mulf %85, %87 : vector<8x128xf32>
    %91 = arith.addf %89, %90 : vector<8x128xf32>
    %92 = math.tanh %91 : vector<8x128xf32>
    %93 = arith.mulf %88, %92 : vector<8x128xf32>
    %cst_37 = arith.constant dense<0.000000e+00> : vector<8x128xf32>
    %94 = tpu.matmul %55, %14, %cst_37 {dimension_numbers = #tpu.dot_dimension_numbers<[1], [0], [0], [1], [0, 0, 1, 1], [], []>} : vector<8x128xf32>, vector<128x128xf32>, vector<8x128xf32> -> vector<8x128xf32>
    %95 = vector.broadcast %15 : vector<1x128xf32> to vector<8x128xf32>
    %96 = arith.addf %94, %95 : vector<8x128xf32>
    %cst_38 = arith.constant dense<0.000000e+00> : vector<8x128xf32>
    %97 = tpu.matmul %75, %13, %cst_38 {dimension_numbers = #tpu.dot_dimension_numbers<[1], [0], [0], [1], [0, 0, 1, 1], [], []>} : vector<8x128xf32>, vector<128x128xf32>, vector<8x128xf32> -> vector<8x128xf32>
    %98 = arith.addf %96, %97 : vector<8x128xf32>
    %99 = math.tanh %98 : vector<8x128xf32>
    %100 = arith.negf %98 : vector<8x128xf32>
    %101 = math.exp %100 : vector<8x128xf32>
    %cst_39 = arith.constant 1.000000e+00 : f32
    %102 = vector.broadcast %cst_39 : f32 to vector<8x128xf32>
    %103 = arith.addf %102, %101 : vector<8x128xf32>
    %104 = arith.divf %102, %103 : vector<8x128xf32>
    %105 = arith.select %5, %99, %104 : vector<8x128xi1>, vector<8x128xf32>
    %c96_i32_40 = arith.constant 96 : i32
    %106 = tpu.dynamic_rotate %105 by %c96_i32_40 dim 1 : vector<8x128xf32>, i32 -> vector<8x128xf32>
    %c64_i32_41 = arith.constant 64 : i32
    %107 = tpu.dynamic_rotate %105 by %c64_i32_41 dim 1 : vector<8x128xf32>, i32 -> vector<8x128xf32>
    %c32_i32_42 = arith.constant 32 : i32
    %108 = tpu.dynamic_rotate %105 by %c32_i32_42 dim 1 : vector<8x128xf32>, i32 -> vector<8x128xf32>
    %109 = arith.mulf %106, %73 : vector<8x128xf32>
    %110 = arith.mulf %105, %107 : vector<8x128xf32>
    %111 = arith.addf %109, %110 : vector<8x128xf32>
    %112 = math.tanh %111 : vector<8x128xf32>
    %113 = arith.mulf %108, %112 : vector<8x128xf32>
    %114 = vector.extract_strided_slice %11 {offsets = [24, 0], sizes = [8, 128], strides = [1, 1]} : vector<64x128xf32> to vector<8x128xf32>
    %cst_43 = arith.constant dense<0.000000e+00> : vector<8x128xf32>
    %115 = tpu.matmul %93, %12, %cst_43 {dimension_numbers = #tpu.dot_dimension_numbers<[1], [0], [0], [1], [0, 0, 1, 1], [], []>} : vector<8x128xf32>, vector<128x128xf32>, vector<8x128xf32> -> vector<8x128xf32>
    %116 = arith.addf %114, %115 : vector<8x128xf32>
    %117 = math.tanh %116 : vector<8x128xf32>
    %118 = arith.negf %116 : vector<8x128xf32>
    %119 = math.exp %118 : vector<8x128xf32>
    %cst_44 = arith.constant 1.000000e+00 : f32
    %120 = vector.broadcast %cst_44 : f32 to vector<8x128xf32>
    %121 = arith.addf %120, %119 : vector<8x128xf32>
    %122 = arith.divf %120, %121 : vector<8x128xf32>
    %123 = arith.select %5, %117, %122 : vector<8x128xi1>, vector<8x128xf32>
    %c96_i32_45 = arith.constant 96 : i32
    %124 = tpu.dynamic_rotate %123 by %c96_i32_45 dim 1 : vector<8x128xf32>, i32 -> vector<8x128xf32>
    %c64_i32_46 = arith.constant 64 : i32
    %125 = tpu.dynamic_rotate %123 by %c64_i32_46 dim 1 : vector<8x128xf32>, i32 -> vector<8x128xf32>
    %c32_i32_47 = arith.constant 32 : i32
    %126 = tpu.dynamic_rotate %123 by %c32_i32_47 dim 1 : vector<8x128xf32>, i32 -> vector<8x128xf32>
    %127 = arith.mulf %124, %91 : vector<8x128xf32>
    %128 = arith.mulf %123, %125 : vector<8x128xf32>
    %129 = arith.addf %127, %128 : vector<8x128xf32>
    %130 = math.tanh %129 : vector<8x128xf32>
    %131 = arith.mulf %126, %130 : vector<8x128xf32>
    %cst_48 = arith.constant dense<0.000000e+00> : vector<8x128xf32>
    %132 = tpu.matmul %93, %14, %cst_48 {dimension_numbers = #tpu.dot_dimension_numbers<[1], [0], [0], [1], [0, 0, 1, 1], [], []>} : vector<8x128xf32>, vector<128x128xf32>, vector<8x128xf32> -> vector<8x128xf32>
    %133 = vector.broadcast %15 : vector<1x128xf32> to vector<8x128xf32>
    %134 = arith.addf %132, %133 : vector<8x128xf32>
    %cst_49 = arith.constant dense<0.000000e+00> : vector<8x128xf32>
    %135 = tpu.matmul %113, %13, %cst_49 {dimension_numbers = #tpu.dot_dimension_numbers<[1], [0], [0], [1], [0, 0, 1, 1], [], []>} : vector<8x128xf32>, vector<128x128xf32>, vector<8x128xf32> -> vector<8x128xf32>
    %136 = arith.addf %134, %135 : vector<8x128xf32>
    %137 = math.tanh %136 : vector<8x128xf32>
    %138 = arith.negf %136 : vector<8x128xf32>
    %139 = math.exp %138 : vector<8x128xf32>
    %cst_50 = arith.constant 1.000000e+00 : f32
    %140 = vector.broadcast %cst_50 : f32 to vector<8x128xf32>
    %141 = arith.addf %140, %139 : vector<8x128xf32>
    %142 = arith.divf %140, %141 : vector<8x128xf32>
    %143 = arith.select %5, %137, %142 : vector<8x128xi1>, vector<8x128xf32>
    %c96_i32_51 = arith.constant 96 : i32
    %144 = tpu.dynamic_rotate %143 by %c96_i32_51 dim 1 : vector<8x128xf32>, i32 -> vector<8x128xf32>
    %c64_i32_52 = arith.constant 64 : i32
    %145 = tpu.dynamic_rotate %143 by %c64_i32_52 dim 1 : vector<8x128xf32>, i32 -> vector<8x128xf32>
    %c32_i32_53 = arith.constant 32 : i32
    %146 = tpu.dynamic_rotate %143 by %c32_i32_53 dim 1 : vector<8x128xf32>, i32 -> vector<8x128xf32>
    %147 = arith.mulf %144, %111 : vector<8x128xf32>
    %148 = arith.mulf %143, %145 : vector<8x128xf32>
    %149 = arith.addf %147, %148 : vector<8x128xf32>
    %150 = math.tanh %149 : vector<8x128xf32>
    %151 = arith.mulf %146, %150 : vector<8x128xf32>
    %152 = vector.extract_strided_slice %11 {offsets = [32, 0], sizes = [8, 128], strides = [1, 1]} : vector<64x128xf32> to vector<8x128xf32>
    %cst_54 = arith.constant dense<0.000000e+00> : vector<8x128xf32>
    %153 = tpu.matmul %131, %12, %cst_54 {dimension_numbers = #tpu.dot_dimension_numbers<[1], [0], [0], [1], [0, 0, 1, 1], [], []>} : vector<8x128xf32>, vector<128x128xf32>, vector<8x128xf32> -> vector<8x128xf32>
    %154 = arith.addf %152, %153 : vector<8x128xf32>
    %155 = math.tanh %154 : vector<8x128xf32>
    %156 = arith.negf %154 : vector<8x128xf32>
    %157 = math.exp %156 : vector<8x128xf32>
    %cst_55 = arith.constant 1.000000e+00 : f32
    %158 = vector.broadcast %cst_55 : f32 to vector<8x128xf32>
    %159 = arith.addf %158, %157 : vector<8x128xf32>
    %160 = arith.divf %158, %159 : vector<8x128xf32>
    %161 = arith.select %5, %155, %160 : vector<8x128xi1>, vector<8x128xf32>
    %c96_i32_56 = arith.constant 96 : i32
    %162 = tpu.dynamic_rotate %161 by %c96_i32_56 dim 1 : vector<8x128xf32>, i32 -> vector<8x128xf32>
    %c64_i32_57 = arith.constant 64 : i32
    %163 = tpu.dynamic_rotate %161 by %c64_i32_57 dim 1 : vector<8x128xf32>, i32 -> vector<8x128xf32>
    %c32_i32_58 = arith.constant 32 : i32
    %164 = tpu.dynamic_rotate %161 by %c32_i32_58 dim 1 : vector<8x128xf32>, i32 -> vector<8x128xf32>
    %165 = arith.mulf %162, %129 : vector<8x128xf32>
    %166 = arith.mulf %161, %163 : vector<8x128xf32>
    %167 = arith.addf %165, %166 : vector<8x128xf32>
    %168 = math.tanh %167 : vector<8x128xf32>
    %169 = arith.mulf %164, %168 : vector<8x128xf32>
    %cst_59 = arith.constant dense<0.000000e+00> : vector<8x128xf32>
    %170 = tpu.matmul %131, %14, %cst_59 {dimension_numbers = #tpu.dot_dimension_numbers<[1], [0], [0], [1], [0, 0, 1, 1], [], []>} : vector<8x128xf32>, vector<128x128xf32>, vector<8x128xf32> -> vector<8x128xf32>
    %171 = vector.broadcast %15 : vector<1x128xf32> to vector<8x128xf32>
    %172 = arith.addf %170, %171 : vector<8x128xf32>
    %cst_60 = arith.constant dense<0.000000e+00> : vector<8x128xf32>
    %173 = tpu.matmul %151, %13, %cst_60 {dimension_numbers = #tpu.dot_dimension_numbers<[1], [0], [0], [1], [0, 0, 1, 1], [], []>} : vector<8x128xf32>, vector<128x128xf32>, vector<8x128xf32> -> vector<8x128xf32>
    %174 = arith.addf %172, %173 : vector<8x128xf32>
    %175 = math.tanh %174 : vector<8x128xf32>
    %176 = arith.negf %174 : vector<8x128xf32>
    %177 = math.exp %176 : vector<8x128xf32>
    %cst_61 = arith.constant 1.000000e+00 : f32
    %178 = vector.broadcast %cst_61 : f32 to vector<8x128xf32>
    %179 = arith.addf %178, %177 : vector<8x128xf32>
    %180 = arith.divf %178, %179 : vector<8x128xf32>
    %181 = arith.select %5, %175, %180 : vector<8x128xi1>, vector<8x128xf32>
    %c96_i32_62 = arith.constant 96 : i32
    %182 = tpu.dynamic_rotate %181 by %c96_i32_62 dim 1 : vector<8x128xf32>, i32 -> vector<8x128xf32>
    %c64_i32_63 = arith.constant 64 : i32
    %183 = tpu.dynamic_rotate %181 by %c64_i32_63 dim 1 : vector<8x128xf32>, i32 -> vector<8x128xf32>
    %c32_i32_64 = arith.constant 32 : i32
    %184 = tpu.dynamic_rotate %181 by %c32_i32_64 dim 1 : vector<8x128xf32>, i32 -> vector<8x128xf32>
    %185 = arith.mulf %182, %149 : vector<8x128xf32>
    %186 = arith.mulf %181, %183 : vector<8x128xf32>
    %187 = arith.addf %185, %186 : vector<8x128xf32>
    %188 = math.tanh %187 : vector<8x128xf32>
    %189 = arith.mulf %184, %188 : vector<8x128xf32>
    %190 = vector.extract_strided_slice %11 {offsets = [40, 0], sizes = [8, 128], strides = [1, 1]} : vector<64x128xf32> to vector<8x128xf32>
    %cst_65 = arith.constant dense<0.000000e+00> : vector<8x128xf32>
    %191 = tpu.matmul %169, %12, %cst_65 {dimension_numbers = #tpu.dot_dimension_numbers<[1], [0], [0], [1], [0, 0, 1, 1], [], []>} : vector<8x128xf32>, vector<128x128xf32>, vector<8x128xf32> -> vector<8x128xf32>
    %192 = arith.addf %190, %191 : vector<8x128xf32>
    %193 = math.tanh %192 : vector<8x128xf32>
    %194 = arith.negf %192 : vector<8x128xf32>
    %195 = math.exp %194 : vector<8x128xf32>
    %cst_66 = arith.constant 1.000000e+00 : f32
    %196 = vector.broadcast %cst_66 : f32 to vector<8x128xf32>
    %197 = arith.addf %196, %195 : vector<8x128xf32>
    %198 = arith.divf %196, %197 : vector<8x128xf32>
    %199 = arith.select %5, %193, %198 : vector<8x128xi1>, vector<8x128xf32>
    %c96_i32_67 = arith.constant 96 : i32
    %200 = tpu.dynamic_rotate %199 by %c96_i32_67 dim 1 : vector<8x128xf32>, i32 -> vector<8x128xf32>
    %c64_i32_68 = arith.constant 64 : i32
    %201 = tpu.dynamic_rotate %199 by %c64_i32_68 dim 1 : vector<8x128xf32>, i32 -> vector<8x128xf32>
    %c32_i32_69 = arith.constant 32 : i32
    %202 = tpu.dynamic_rotate %199 by %c32_i32_69 dim 1 : vector<8x128xf32>, i32 -> vector<8x128xf32>
    %203 = arith.mulf %200, %167 : vector<8x128xf32>
    %204 = arith.mulf %199, %201 : vector<8x128xf32>
    %205 = arith.addf %203, %204 : vector<8x128xf32>
    %206 = math.tanh %205 : vector<8x128xf32>
    %207 = arith.mulf %202, %206 : vector<8x128xf32>
    %cst_70 = arith.constant dense<0.000000e+00> : vector<8x128xf32>
    %208 = tpu.matmul %169, %14, %cst_70 {dimension_numbers = #tpu.dot_dimension_numbers<[1], [0], [0], [1], [0, 0, 1, 1], [], []>} : vector<8x128xf32>, vector<128x128xf32>, vector<8x128xf32> -> vector<8x128xf32>
    %209 = vector.broadcast %15 : vector<1x128xf32> to vector<8x128xf32>
    %210 = arith.addf %208, %209 : vector<8x128xf32>
    %cst_71 = arith.constant dense<0.000000e+00> : vector<8x128xf32>
    %211 = tpu.matmul %189, %13, %cst_71 {dimension_numbers = #tpu.dot_dimension_numbers<[1], [0], [0], [1], [0, 0, 1, 1], [], []>} : vector<8x128xf32>, vector<128x128xf32>, vector<8x128xf32> -> vector<8x128xf32>
    %212 = arith.addf %210, %211 : vector<8x128xf32>
    %213 = math.tanh %212 : vector<8x128xf32>
    %214 = arith.negf %212 : vector<8x128xf32>
    %215 = math.exp %214 : vector<8x128xf32>
    %cst_72 = arith.constant 1.000000e+00 : f32
    %216 = vector.broadcast %cst_72 : f32 to vector<8x128xf32>
    %217 = arith.addf %216, %215 : vector<8x128xf32>
    %218 = arith.divf %216, %217 : vector<8x128xf32>
    %219 = arith.select %5, %213, %218 : vector<8x128xi1>, vector<8x128xf32>
    %c96_i32_73 = arith.constant 96 : i32
    %220 = tpu.dynamic_rotate %219 by %c96_i32_73 dim 1 : vector<8x128xf32>, i32 -> vector<8x128xf32>
    %c64_i32_74 = arith.constant 64 : i32
    %221 = tpu.dynamic_rotate %219 by %c64_i32_74 dim 1 : vector<8x128xf32>, i32 -> vector<8x128xf32>
    %c32_i32_75 = arith.constant 32 : i32
    %222 = tpu.dynamic_rotate %219 by %c32_i32_75 dim 1 : vector<8x128xf32>, i32 -> vector<8x128xf32>
    %223 = arith.mulf %220, %187 : vector<8x128xf32>
    %224 = arith.mulf %219, %221 : vector<8x128xf32>
    %225 = arith.addf %223, %224 : vector<8x128xf32>
    %226 = math.tanh %225 : vector<8x128xf32>
    %227 = arith.mulf %222, %226 : vector<8x128xf32>
    %228 = vector.extract_strided_slice %11 {offsets = [48, 0], sizes = [8, 128], strides = [1, 1]} : vector<64x128xf32> to vector<8x128xf32>
    %cst_76 = arith.constant dense<0.000000e+00> : vector<8x128xf32>
    %229 = tpu.matmul %207, %12, %cst_76 {dimension_numbers = #tpu.dot_dimension_numbers<[1], [0], [0], [1], [0, 0, 1, 1], [], []>} : vector<8x128xf32>, vector<128x128xf32>, vector<8x128xf32> -> vector<8x128xf32>
    %230 = arith.addf %228, %229 : vector<8x128xf32>
    %231 = math.tanh %230 : vector<8x128xf32>
    %232 = arith.negf %230 : vector<8x128xf32>
    %233 = math.exp %232 : vector<8x128xf32>
    %cst_77 = arith.constant 1.000000e+00 : f32
    %234 = vector.broadcast %cst_77 : f32 to vector<8x128xf32>
    %235 = arith.addf %234, %233 : vector<8x128xf32>
    %236 = arith.divf %234, %235 : vector<8x128xf32>
    %237 = arith.select %5, %231, %236 : vector<8x128xi1>, vector<8x128xf32>
    %c96_i32_78 = arith.constant 96 : i32
    %238 = tpu.dynamic_rotate %237 by %c96_i32_78 dim 1 : vector<8x128xf32>, i32 -> vector<8x128xf32>
    %c64_i32_79 = arith.constant 64 : i32
    %239 = tpu.dynamic_rotate %237 by %c64_i32_79 dim 1 : vector<8x128xf32>, i32 -> vector<8x128xf32>
    %c32_i32_80 = arith.constant 32 : i32
    %240 = tpu.dynamic_rotate %237 by %c32_i32_80 dim 1 : vector<8x128xf32>, i32 -> vector<8x128xf32>
    %241 = arith.mulf %238, %205 : vector<8x128xf32>
    %242 = arith.mulf %237, %239 : vector<8x128xf32>
    %243 = arith.addf %241, %242 : vector<8x128xf32>
    %244 = math.tanh %243 : vector<8x128xf32>
    %245 = arith.mulf %240, %244 : vector<8x128xf32>
    %cst_81 = arith.constant dense<0.000000e+00> : vector<8x128xf32>
    %246 = tpu.matmul %207, %14, %cst_81 {dimension_numbers = #tpu.dot_dimension_numbers<[1], [0], [0], [1], [0, 0, 1, 1], [], []>} : vector<8x128xf32>, vector<128x128xf32>, vector<8x128xf32> -> vector<8x128xf32>
    %247 = vector.broadcast %15 : vector<1x128xf32> to vector<8x128xf32>
    %248 = arith.addf %246, %247 : vector<8x128xf32>
    %cst_82 = arith.constant dense<0.000000e+00> : vector<8x128xf32>
    %249 = tpu.matmul %227, %13, %cst_82 {dimension_numbers = #tpu.dot_dimension_numbers<[1], [0], [0], [1], [0, 0, 1, 1], [], []>} : vector<8x128xf32>, vector<128x128xf32>, vector<8x128xf32> -> vector<8x128xf32>
    %250 = arith.addf %248, %249 : vector<8x128xf32>
    %251 = math.tanh %250 : vector<8x128xf32>
    %252 = arith.negf %250 : vector<8x128xf32>
    %253 = math.exp %252 : vector<8x128xf32>
    %cst_83 = arith.constant 1.000000e+00 : f32
    %254 = vector.broadcast %cst_83 : f32 to vector<8x128xf32>
    %255 = arith.addf %254, %253 : vector<8x128xf32>
    %256 = arith.divf %254, %255 : vector<8x128xf32>
    %257 = arith.select %5, %251, %256 : vector<8x128xi1>, vector<8x128xf32>
    %c96_i32_84 = arith.constant 96 : i32
    %258 = tpu.dynamic_rotate %257 by %c96_i32_84 dim 1 : vector<8x128xf32>, i32 -> vector<8x128xf32>
    %c64_i32_85 = arith.constant 64 : i32
    %259 = tpu.dynamic_rotate %257 by %c64_i32_85 dim 1 : vector<8x128xf32>, i32 -> vector<8x128xf32>
    %c32_i32_86 = arith.constant 32 : i32
    %260 = tpu.dynamic_rotate %257 by %c32_i32_86 dim 1 : vector<8x128xf32>, i32 -> vector<8x128xf32>
    %261 = arith.mulf %258, %225 : vector<8x128xf32>
    %262 = arith.mulf %257, %259 : vector<8x128xf32>
    %263 = arith.addf %261, %262 : vector<8x128xf32>
    %264 = math.tanh %263 : vector<8x128xf32>
    %265 = arith.mulf %260, %264 : vector<8x128xf32>
    %266 = vector.extract_strided_slice %11 {offsets = [56, 0], sizes = [8, 128], strides = [1, 1]} : vector<64x128xf32> to vector<8x128xf32>
    %cst_87 = arith.constant dense<0.000000e+00> : vector<8x128xf32>
    %267 = tpu.matmul %245, %12, %cst_87 {dimension_numbers = #tpu.dot_dimension_numbers<[1], [0], [0], [1], [0, 0, 1, 1], [], []>} : vector<8x128xf32>, vector<128x128xf32>, vector<8x128xf32> -> vector<8x128xf32>
    %268 = arith.addf %266, %267 : vector<8x128xf32>
    %269 = math.tanh %268 : vector<8x128xf32>
    %270 = arith.negf %268 : vector<8x128xf32>
    %271 = math.exp %270 : vector<8x128xf32>
    %cst_88 = arith.constant 1.000000e+00 : f32
    %272 = vector.broadcast %cst_88 : f32 to vector<8x128xf32>
    %273 = arith.addf %272, %271 : vector<8x128xf32>
    %274 = arith.divf %272, %273 : vector<8x128xf32>
    %275 = arith.select %5, %269, %274 : vector<8x128xi1>, vector<8x128xf32>
    %c96_i32_89 = arith.constant 96 : i32
    %276 = tpu.dynamic_rotate %275 by %c96_i32_89 dim 1 : vector<8x128xf32>, i32 -> vector<8x128xf32>
    %c64_i32_90 = arith.constant 64 : i32
    %277 = tpu.dynamic_rotate %275 by %c64_i32_90 dim 1 : vector<8x128xf32>, i32 -> vector<8x128xf32>
    %c32_i32_91 = arith.constant 32 : i32
    %278 = tpu.dynamic_rotate %275 by %c32_i32_91 dim 1 : vector<8x128xf32>, i32 -> vector<8x128xf32>
    %279 = arith.mulf %276, %243 : vector<8x128xf32>
    %280 = arith.mulf %275, %277 : vector<8x128xf32>
    %281 = arith.addf %279, %280 : vector<8x128xf32>
    %282 = math.tanh %281 : vector<8x128xf32>
    %283 = arith.mulf %278, %282 : vector<8x128xf32>
    %cst_92 = arith.constant dense<0.000000e+00> : vector<8x128xf32>
    %284 = tpu.matmul %245, %14, %cst_92 {dimension_numbers = #tpu.dot_dimension_numbers<[1], [0], [0], [1], [0, 0, 1, 1], [], []>} : vector<8x128xf32>, vector<128x128xf32>, vector<8x128xf32> -> vector<8x128xf32>
    %285 = vector.broadcast %15 : vector<1x128xf32> to vector<8x128xf32>
    %286 = arith.addf %284, %285 : vector<8x128xf32>
    %cst_93 = arith.constant dense<0.000000e+00> : vector<8x128xf32>
    %287 = tpu.matmul %265, %13, %cst_93 {dimension_numbers = #tpu.dot_dimension_numbers<[1], [0], [0], [1], [0, 0, 1, 1], [], []>} : vector<8x128xf32>, vector<128x128xf32>, vector<8x128xf32> -> vector<8x128xf32>
    %288 = arith.addf %286, %287 : vector<8x128xf32>
    %289 = math.tanh %288 : vector<8x128xf32>
    %290 = arith.negf %288 : vector<8x128xf32>
    %291 = math.exp %290 : vector<8x128xf32>
    %cst_94 = arith.constant 1.000000e+00 : f32
    %292 = vector.broadcast %cst_94 : f32 to vector<8x128xf32>
    %293 = arith.addf %292, %291 : vector<8x128xf32>
    %294 = arith.divf %292, %293 : vector<8x128xf32>
    %295 = arith.select %5, %289, %294 : vector<8x128xi1>, vector<8x128xf32>
    %c96_i32_95 = arith.constant 96 : i32
    %296 = tpu.dynamic_rotate %295 by %c96_i32_95 dim 1 : vector<8x128xf32>, i32 -> vector<8x128xf32>
    %c64_i32_96 = arith.constant 64 : i32
    %297 = tpu.dynamic_rotate %295 by %c64_i32_96 dim 1 : vector<8x128xf32>, i32 -> vector<8x128xf32>
    %c32_i32_97 = arith.constant 32 : i32
    %298 = tpu.dynamic_rotate %295 by %c32_i32_97 dim 1 : vector<8x128xf32>, i32 -> vector<8x128xf32>
    %299 = arith.mulf %296, %263 : vector<8x128xf32>
    %300 = arith.mulf %295, %297 : vector<8x128xf32>
    %301 = arith.addf %299, %300 : vector<8x128xf32>
    %302 = math.tanh %301 : vector<8x128xf32>
    %303 = arith.mulf %298, %302 : vector<8x128xf32>
    %cst_98 = arith.constant dense<0.000000e+00> : vector<8x128xf32>
    %304 = tpu.matmul %283, %14, %cst_98 {dimension_numbers = #tpu.dot_dimension_numbers<[1], [0], [0], [1], [0, 0, 1, 1], [], []>} : vector<8x128xf32>, vector<128x128xf32>, vector<8x128xf32> -> vector<8x128xf32>
    %305 = vector.broadcast %15 : vector<1x128xf32> to vector<8x128xf32>
    %306 = arith.addf %304, %305 : vector<8x128xf32>
    %cst_99 = arith.constant dense<0.000000e+00> : vector<8x128xf32>
    %307 = tpu.matmul %303, %13, %cst_99 {dimension_numbers = #tpu.dot_dimension_numbers<[1], [0], [0], [1], [0, 0, 1, 1], [], []>} : vector<8x128xf32>, vector<128x128xf32>, vector<8x128xf32> -> vector<8x128xf32>
    %308 = arith.addf %306, %307 : vector<8x128xf32>
    %309 = math.tanh %308 : vector<8x128xf32>
    %310 = arith.negf %308 : vector<8x128xf32>
    %311 = math.exp %310 : vector<8x128xf32>
    %cst_100 = arith.constant 1.000000e+00 : f32
    %312 = vector.broadcast %cst_100 : f32 to vector<8x128xf32>
    %313 = arith.addf %312, %311 : vector<8x128xf32>
    %314 = arith.divf %312, %313 : vector<8x128xf32>
    %315 = arith.select %5, %309, %314 : vector<8x128xi1>, vector<8x128xf32>
    %c96_i32_101 = arith.constant 96 : i32
    %316 = tpu.dynamic_rotate %315 by %c96_i32_101 dim 1 : vector<8x128xf32>, i32 -> vector<8x128xf32>
    %c64_i32_102 = arith.constant 64 : i32
    %317 = tpu.dynamic_rotate %315 by %c64_i32_102 dim 1 : vector<8x128xf32>, i32 -> vector<8x128xf32>
    %c32_i32_103 = arith.constant 32 : i32
    %318 = tpu.dynamic_rotate %315 by %c32_i32_103 dim 1 : vector<8x128xf32>, i32 -> vector<8x128xf32>
    %319 = arith.mulf %316, %301 : vector<8x128xf32>
    %320 = arith.mulf %315, %317 : vector<8x128xf32>
    %321 = arith.addf %319, %320 : vector<8x128xf32>
    %322 = math.tanh %321 : vector<8x128xf32>
    %323 = arith.mulf %318, %322 : vector<8x128xf32>
    %c0_104 = arith.constant 0 : index
    %c0_105 = arith.constant 0 : index
    %324 = vector.load %arg7[%c0_104, %c0_105] : memref<128x128xf32, #tpu.memory_space<vmem>>, vector<128x128xf32>
    %cst_106 = arith.constant dense<0.000000e+00> : vector<8x128xf32>
    %325 = tpu.matmul %323, %324, %cst_106 {dimension_numbers = #tpu.dot_dimension_numbers<[1], [0], [0], [1], [0, 0, 1, 1], [], []>} : vector<8x128xf32>, vector<128x128xf32>, vector<8x128xf32> -> vector<8x128xf32>
    %c0_107 = arith.constant 0 : index
    %c0_108 = arith.constant 0 : index
    %326 = vector.load %arg8[%c0_107, %c0_108] : memref<1x128xf32, #tpu.memory_space<vmem>>, vector<1x128xf32>
    %327 = vector.broadcast %326 : vector<1x128xf32> to vector<8x128xf32>
    %328 = arith.addf %325, %327 : vector<8x128xf32>
    %c0_109 = arith.constant 0 : index
    %c0_110 = arith.constant 0 : index
    %329 = vector.load %arg9[%c0_109, %c0_110] : memref<8x128xf32, #tpu.memory_space<vmem>>, vector<8x128xf32>
    tpu.vector_store %arg9[%c0_109, %c0_110], %328 {strides = array<i32>} : memref<8x128xf32, #tpu.memory_space<vmem>>, vector<8x128xf32>,
    return
  }
}

</mosaic_0001>

<bundles_post_ra>
// kernel: tpu_custom_call.1
= control target key start
LH: loop header
LB: loop body
LE: loop exit
PB: predicated region body
PF: predicated region fallthrough
CT: control target
= control target key end

     0   :  { %14 = vsyncpa [#allocation3], 0  ;;  %s2502_s0 = inlined_call_operand.vmem [shape: f32[64,4], index: 0, kind: input, shape index: {}]   ;;  %s2503_s1 = inlined_call_operand.vmem [shape: f32[4,128], index: 1, kind: input, shape index: {}]   ;;  %s2504_s2 = inlined_call_operand.hbm [shape: f32[128,128], index: 2, kind: input, shape index: {}]   ;;  %s2505_s3 = inlined_call_operand.vmem [shape: f32[1,128], index: 3, kind: input, shape index: {}]   ;;  %s2506_s4 = inlined_call_operand.hbm [shape: f32[128,128], index: 4, kind: input, shape index: {}]   ;;  %s2507_s5 = inlined_call_operand.hbm [shape: f32[128,128], index: 5, kind: input, shape index: {}]   ;;  %s2508_s6 = inlined_call_operand.vmem [shape: f32[1,128], index: 6, kind: input, shape index: {}]   ;;  %s2509_s7 = inlined_call_operand.hbm [shape: f32[128,128], index: 7, kind: input, shape index: {}]   ;;  %s2510_s8 = inlined_call_operand.vmem [shape: f32[1,128], index: 8, kind: input, shape index: {}]   ;;  %s2511_s9 = inlined_call_operand.hbm [shape: f32[8,128], index: 9, kind: output, shape index: {}]  }
   0x1   :  { %15 = vsyncpa [#allocation6], 0 }
   0x2   :  { %16 = vsyncpa [#allocation9], 0 }
   0x3   :  { %17 = vsyncpa [#allocation4], 0  ;;  %s41_s11 = sshll.u32 %s2506_s4, 4  ;;  %s1649_s12 = smov [#allocation5]   ;;  %s42_s11 = int_to_ptr.hbm [resolvable:$true] %s41_s11 }
   0x4   :  { %s43_s13 = sshll.u32 %s1649_s12, 4  ;;  %s26_s16 = sshll.u32 %s2504_s2, 4  ;;  %s44_s13 = int_to_ptr.vmem [resolvable:$true] %s43_s13  ;;  %s27_s16 = int_to_ptr.hbm [resolvable:$true] %s26_s16 }
   0x5   :  { %s1650_s17 = smov 128   ;;  %s1651_s18 = smov 8  }
   0x6   :  { %49 = dma.hbm_to_vmem [thread:$0]  %s42_s11, 2048, %s44_s13, [#allocation6], %s1650_s17, %s1650_s17, %s1651_s18  }
   0x7   :  { %s1652_s19 = smov [#allocation2]   ;;  %s54_s23 = sshll.u32 %s2507_s5, 4  ;;  %s55_s23 = int_to_ptr.hbm [resolvable:$true] %s54_s23 }
   0x8   :  { %s28_s20 = sshll.u32 %s1652_s19, 4  ;;  %s69_s25 = sshll.u32 %s2509_s7, 4  ;;  %s29_s20 = int_to_ptr.vmem [resolvable:$true] %s28_s20  ;;  %s70_s25 = int_to_ptr.hbm [resolvable:$true] %s69_s25 }
   0x9   :  { %34 = dma.hbm_to_vmem [thread:$0]  %s27_s16, 2048, %s29_s20, [#allocation3], %s1650_s17, %s1650_s17, %s1651_s18  }
   0xa   :  { %s1653_s26 = smov [#allocation7]   ;;  %s1654_s2 = smov [#allocation8]  }
   0xb   :  { %s56_s27 = sshll.u32 %s1653_s26, 4  ;;  %s71_s28 = sshll.u32 %s1654_s2, 4  ;;  %s57_s27 = int_to_ptr.vmem [resolvable:$true] %s56_s27  ;;  %s72_s28 = int_to_ptr.vmem [resolvable:$true] %s71_s28 }
   0xc   :  { %62 = dma.hbm_to_vmem [thread:$0]  %s55_s23, 2048, %s57_s27, [#allocation6], %s1650_s17, %s1650_s17, %s1651_s18  }
   0xd   :  { %77 = dma.hbm_to_vmem [thread:$0]  %s70_s25, 2048, %s72_s28, [#allocation9], %s1650_s17, %s1650_s17, %s1651_s18  }
   0xe   :  { %1641 = dma.done.wait [#allocation3], 2048  }
   0xf   :  { %1642 = vsyncadd [#allocation3], 4294965248 }
  0x10   :  { %1643 = dma.done.wait [#allocation6], 4096  }
  0x11   :  { %1644 = vsyncadd [#allocation6], 4294963200 }
  0x12   :  { %1645 = dma.done.wait [#allocation9], 2048  }
  0x13   :  { %1646 = vsyncadd [#allocation9], 4294965248  ;;  %v1722_v0 = vld [vmem:[#allocation2 + $0x78] sm:$0xff]  ;;  %v1724_v1 = vld [vmem:[#allocation2 + $0x70] sm:$0xff]  ;;  %vm139_vm0 = vcmask 1043456   ;;  %vm114_vm1 = vcmask 31744   ;;  %v96_v33 = vlaneseq }
  0x14   :  { %233 = vmatpush.msra.mxu1 %v1722_v0  ;;  %286 = vmatpush.msra.mxu2 %v1722_v0  ;;  %v1728_v2 = vld [vmem:[#allocation2 + $0x68] sm:$0xff]  ;;  %v1732_v3 = vld [vmem:[#allocation2 + $0x60] sm:$0xff]  ;;  %v1741_v6 = vld [vmem:[#allocation2 + $0x58] sm:$0xff]  ;;  %v1655_v18 = vmov 0.0   ;;  %s1656_s11 = smov 32   ;;  %s1657_s12 = smov 96  }
  0x15   :  { %v109_v4 = vld [vmem:[%s2503_s1] sm:$0xf]  ;;  %v1746_v7 = vld [vmem:[#allocation2 + $0x50] sm:$0xff]  ;;  %v1750_v8 = vld [vmem:[#allocation2 + $0x48] sm:$0xff]  ;;  %v97_v35 = vand.u32 127, %v96_v33  ;;  %s1658_s13 = smov 64  }
  0x16   :  { %234 = vmatpush.msra.mxu1 %v1724_v1  ;;  %287 = vmatpush.msra.mxu2 %v1724_v1  ;;  %v101_v5 = vld [vmem:[%s2502_s0] sm:$0xff]  ;;  %v1758_v10 = vld [vmem:[#allocation2 + $0x38] sm:$0xff]  ;;  %v1762_v11 = vld [vmem:[#allocation2 + $0x30] sm:$0xff]  ;;  %s1659_s29 = smov [#allocation10]  }
  0x17   :  { %1304 = vmatpush.msk.msra.mxu0 %vm139_vm0, %v109_v4  ;;  %v1754_v9 = vld [vmem:[#allocation2 + $0x40] sm:$0xff]  ;;  %v1766_v12 = vld [vmem:[#allocation2 + $0x28] sm:$0xff]  ;;  %v1774_v14 = vld [vmem:[#allocation2 + $0x18] sm:$0xff]  ;;  %vm98_vm2 = vcmp.ge.s32.totalorder %v97_v35, 64  ;;  %vm99_vm3 = vcmp.lt.s32.totalorder %v97_v35, 96  ;;  %s1290_s30 = sshll.u32 %s1659_s29, 4  ;;  %s1291_s30 = int_to_ptr.vmem [resolvable:$true] %s1290_s30 }
  0x18   :  { %235 = vmatpush.msra.mxu1 %v1728_v2  ;;  %1305 = vmatmul.msk.f32.vlgmr.msra.gmra.mxu0 %vm114_vm1, %v101_v5  ;;  %v1770_v13 = vld [vmem:[#allocation2 + $0x20] sm:$0xff]  ;;  %v1778_v15 = vld [vmem:[#allocation2 + $0x10] sm:$0xff]  ;;  %v1782_v16 = vld [vmem:[#allocation2 + $0x8] sm:$0xff] }
  0x19   :  { %288 = vmatpush.msra.mxu2 %v1728_v2  ;;  %2528 = vst [vmem:[#allocation15_spill] sm:$0xff] %v1782_v16  ;;  %v1786_v17 = vld [vmem:[#allocation2] sm:$0xff]  ;;  %v1816_v25 = vld [vmem:[#allocation5 + $0x78] sm:$0xff]  ;;  %v1818_v26 = vld [vmem:[#allocation5 + $0x70] sm:$0xff] }
  0x1a   :  { %236 = vmatpush.msra.mxu1 %v1732_v3  ;;  %2529 = vst [vmem:[#allocation16_spill] sm:$0xff] %v1786_v17  ;;  %v1813_v19 = vld [vmem:[%s2505_s3] ss:$0 sm:$0xff]  ;;  %342 = vmatpush.msra.mxu3 %v1816_v25  ;;  %v1821_v27 = vld [vmem:[#allocation7 + $0x78] sm:$0xff]  ;;  %v1823_v28 = vld [vmem:[#allocation5 + $0x68] sm:$0xff] }
  0x1b   :  { %289 = vmatpush.msra.mxu2 %v1732_v3  ;;  %2530 = vst [vmem:[#allocation17_spill] sm:$0xff] %v1813_v19  ;;  %488 = vmatpush.msrb.mxu0 %v1821_v27  ;;  %v1828_v31 = vld [vmem:[#allocation5 + $0x60] sm:$0xff]  ;;  %v1831_v32 = vld [vmem:[#allocation5 + $0x58] sm:$0xff]  ;;  %vm1835_vm5 = vmand %vm98_vm2, %vm99_vm3 }
  0x1c   :  { %237 = vmatpush.msra.mxu1 %v1741_v6  ;;  %343 = vmatpush.msra.mxu3 %v1818_v26  ;;  %v1849_v48 = vld [vmem:[#allocation5 + $0x50] sm:$0xff]  ;;  %v1855_v50 = vld [vmem:[#allocation5 + $0x48] sm:$0xff]  ;;  %v1859_v52 = vld [vmem:[#allocation5 + $0x40] sm:$0xff] }
  0x1d   :  { %290 = vmatpush.msra.mxu2 %v1741_v6  ;;  %v1851_v49 = vld [vmem:[#allocation7 + $0x70] sm:$0xff]  ;;  %v1857_v51 = vld [vmem:[#allocation7 + $0x68] sm:$0xff]  ;;  %v1861_v53 = vld [vmem:[#allocation7 + $0x60] sm:$0xff] }
  0x1e   :  { %238 = vmatpush.msra.mxu1 %v1746_v7  ;;  %344 = vmatpush.msra.mxu3 %v1823_v28  ;;  %v1866_v54 = vld [vmem:[#allocation5 + $0x38] sm:$0xff]  ;;  %v1876_v56 = vld [vmem:[#allocation5 + $0x30] sm:$0xff]  ;;  %v1883_v58 = vld [vmem:[#allocation5 + $0x28] sm:$0xff] }
  0x1f   :  { %291 = vmatpush.msra.mxu2 %v1746_v7  ;;  %489 = vmatpush.msrb.mxu0 %v1851_v49  ;;  %v1868_v55 = vld [vmem:[#allocation7 + $0x58] sm:$0xff]  ;;  %v1878_v57 = vld [vmem:[#allocation7 + $0x50] sm:$0xff]  ;;  %v1885_v59 = vld [vmem:[#allocation7 + $0x48] sm:$0xff] }
  0x20   :  { %239 = vmatpush.msra.mxu1 %v1750_v8  ;;  %345 = vmatpush.msra.mxu3 %v1828_v31  ;;  %v1890_v60 = vld [vmem:[#allocation5 + $0x20] sm:$0xff]  ;;  %v1897_v62 = vld [vmem:[#allocation5 + $0x18] sm:$0xff]  ;;  %v1901_v4 = vld [vmem:[#allocation5 + $0x10] sm:$0xff] }
  0x21   :  { %292 = vmatpush.msra.mxu2 %v1750_v8  ;;  %490 = vmatpush.msrb.mxu0 %v1857_v51  ;;  %v1892_v61 = vld [vmem:[#allocation7 + $0x40] sm:$0xff]  ;;  %v1899_v63 = vld [vmem:[#allocation7 + $0x38] sm:$0xff]  ;;  %2533 = vst [vmem:[#allocation18_spill] sm:$0xff] %v1901_v4  ;;  %v1903_v5 = vld [vmem:[#allocation7 + $0x30] sm:$0xff] }
  0x22   :  { %240 = vmatpush.msra.mxu1 %v1754_v9  ;;  %346 = vmatpush.msra.mxu3 %v1831_v32  ;;  %v1936_v33 = vld [vmem:[#allocation7 + $0x8] sm:$0xff]  ;;  %v1252_v41 = vld [vmem:[#allocation8 + $0x40] sm:$0xff] }
  0x23   :  { %293 = vmatpush.msra.mxu2 %v1754_v9  ;;  %491 = vmatpush.msrb.mxu0 %v1861_v53  ;;  %2536 = vst [vmem:[#allocation21_spill] sm:$0xff] %v1936_v33 }
  0x24   :  { %241 = vmatpush.msra.mxu1 %v1758_v10  ;;  %347 = vmatpush.msra.mxu3 %v1849_v48 }
  0x25   :  { %294 = vmatpush.msra.mxu2 %v1758_v10  ;;  %492 = vmatpush.msrb.mxu0 %v1868_v55 }
  0x26   :  { %242 = vmatpush.msra.mxu1 %v1762_v11  ;;  %348 = vmatpush.msra.mxu3 %v1855_v50 }
  0x27   :  { %295 = vmatpush.msra.mxu2 %v1762_v11  ;;  %493 = vmatpush.msrb.mxu0 %v1878_v57 }
  0x28   :  { %243 = vmatpush.msra.mxu1 %v1766_v12  ;;  %349 = vmatpush.msra.mxu3 %v1859_v52 }
  0x29   :  { %296 = vmatpush.msra.mxu2 %v1766_v12  ;;  %494 = vmatpush.msrb.mxu0 %v1885_v59 }
  0x2a   :  { %244 = vmatpush.msra.mxu1 %v1770_v13  ;;  %350 = vmatpush.msra.mxu3 %v1866_v54 }
  0x2b   :  { %297 = vmatpush.msra.mxu2 %v1770_v13  ;;  %495 = vmatpush.msrb.mxu0 %v1892_v61 }
  0x2c   :  { %245 = vmatpush.msra.mxu1 %v1774_v14  ;;  %351 = vmatpush.msra.mxu3 %v1876_v56 }
  0x2d   :  { %298 = vmatpush.msra.mxu2 %v1774_v14  ;;  %496 = vmatpush.msrb.mxu0 %v1899_v63 }
  0x2e   :  { %246 = vmatpush.msra.mxu1 %v1778_v15  ;;  %352 = vmatpush.msra.mxu3 %v1883_v58 }
  0x2f   :  { %299 = vmatpush.msra.mxu2 %v1778_v15  ;;  %497 = vmatpush.msrb.mxu0 %v1903_v5 }
  0x30   :  { %247 = vmatpush.msra.mxu1 %v1782_v16  ;;  %353 = vmatpush.msra.mxu3 %v1890_v60 }
  0x31   :  { %300 = vmatpush.msra.mxu2 %v1782_v16 }
  0x32   :  { %248 = vmatpush.msra.mxu1 %v1786_v17  ;;  %354 = vmatpush.msra.mxu3 %v1897_v62 }
  0x33   :  { %249 = vmatmul.f32.vlgmr.msra.gmra.mxu1 %v1655_v18  ;;  %301 = vmatpush.msra.mxu2 %v1786_v17 }
  0x34   :  { %362 = vmatpush.msrb.mxu1 %v1821_v27  ;;  %355 = vmatpush.msra.mxu3 %v1901_v4 }
  0x35   :  { %415 = vmatpush.msrb.mxu2 %v1722_v0 }
  0x36   :  { %363 = vmatpush.msrb.mxu1 %v1851_v49 }
  0x37   :  { %416 = vmatpush.msrb.mxu2 %v1724_v1 }
  0x38   :  { %364 = vmatpush.msrb.mxu1 %v1857_v51 }
  0x39   :  { %417 = vmatpush.msrb.mxu2 %v1728_v2 }
  0x3a   :  { %365 = vmatpush.msrb.mxu1 %v1861_v53 }
  0x3b   :  { %418 = vmatpush.msrb.mxu2 %v1732_v3 }
  0x3c   :  { %366 = vmatpush.msrb.mxu1 %v1868_v55 }
  0x3d   :  { %419 = vmatpush.msrb.mxu2 %v1741_v6 }
  0x3e   :  { %367 = vmatpush.msrb.mxu1 %v1878_v57 }
  0x3f   :  { %420 = vmatpush.msrb.mxu2 %v1746_v7 }
  0x40   :  { %368 = vmatpush.msrb.mxu1 %v1885_v59 }
  0x41   :  { %421 = vmatpush.msrb.mxu2 %v1750_v8 }
  0x42   :  { %369 = vmatpush.msrb.mxu1 %v1892_v61 }
  0x43   :  { %422 = vmatpush.msrb.mxu2 %v1754_v9 }
  0x44   :  { %370 = vmatpush.msrb.mxu1 %v1899_v63 }
  0x45   :  { %423 = vmatpush.msrb.mxu2 %v1758_v10 }
  0x46   :  { %371 = vmatpush.msrb.mxu1 %v1903_v5 }
  0x47   :  { %424 = vmatpush.msrb.mxu2 %v1762_v11 }
  0x49   :  { %425 = vmatpush.msrb.mxu2 %v1766_v12 }
  0x4b   :  { %426 = vmatpush.msrb.mxu2 %v1770_v13 }
  0x4d   :  { %427 = vmatpush.msrb.mxu2 %v1774_v14 }
  0x4f   :  { %428 = vmatpush.msrb.mxu2 %v1778_v15 }
  0x51   :  { %429 = vmatpush.msrb.mxu2 %v1782_v16 }
  0x53   :  { %430 = vmatpush.msrb.mxu2 %v1786_v17 }
  0x95   :  { %v160_v20 = vpop.f32.mrf.mxu0 }
  0x96   :  { %v161_v21 = vadd.f32 %v1813_v19, %v160_v20  ;;  %v1908_v20 = vld [vmem:[#allocation5 + $0x8] sm:$0xff] }
  0x97   :  { %2534 = vst [vmem:[#allocation19_spill] sm:$0xff] %v1908_v20  ;;  %356 = vmatpush.msra.mxu3 %v1908_v20 }
  0xb0   :  { %v250_v22 = vpop.f32.mrf.mxu1 }
  0xb1   :  { %v253_v23 = vadd.f32 %v250_v22, %v161_v21  ;;  %v1910_v21 = vld [vmem:[#allocation7 + $0x28] sm:$0xff]  ;;  %v1915_v22 = vld [vmem:[#allocation5] sm:$0xff] }
  0xb2   :  { %2535 = vst [vmem:[#allocation20_spill] sm:$0xff] %v1915_v22  ;;  %372 = vmatpush.msrb.mxu1 %v1910_v21  ;;  %498 = vmatpush.msrb.mxu0 %v1910_v21 }
  0xb3   :  { %v1313_v24 = vmul.f32 -1.442695, %v253_v23  ;;  %357 = vmatpush.msra.mxu3 %v1915_v22 }
  0xb5   :  { %1343 = vpow2.f32 %v1313_v24  ;;  %v1925_v24 = vld [vmem:[#allocation7 + $0x18] sm:$0xff]  ;;  %468 = vmatpush.msrb.mxu3 %v1816_v25 }
  0xb7   :  { %469 = vmatpush.msrb.mxu3 %v1818_v26 }
  0xb9   :  { %470 = vmatpush.msrb.mxu3 %v1823_v28 }
  0xbb   :  { %v1344_v29 = vpop.eup %1343  ;;  %471 = vmatpush.msrb.mxu3 %v1828_v31 }
  0xbc   :  { %v258_v30 = vadd.f32 1.0, %v1344_v29  ;;  %v1927_v29 = vld [vmem:[#allocation7 + $0x10] sm:$0xff] }
  0xbd   :  { %472 = vmatpush.msrb.mxu3 %v1831_v32 }
  0xbe   :  { %1345 = vrcp.f32 %v258_v30  ;;  %v270_v38 = vand.u32 2147483648, %v258_v30  ;;  %v268_v40 = vand.u32 2147483647, %v258_v30  ;;  %vm264_vm6 = vweird.f32 %v258_v30 }
  0xbf   :  { %1347 = vtanh.f32 %v253_v23  ;;  %v1917_v23 = vld [vmem:[#allocation7 + $0x20] sm:$0xff]  ;;  %473 = vmatpush.msrb.mxu3 %v1849_v48 }
  0xc0   :  { %v271_v43 = vor.u32 1.1754944e-38, %v270_v38  ;;  %vm269_vm8 = vcmp.eq.f32.partialorder %v268_v40, 8.507059e+37  ;;  %373 = vmatpush.msrb.mxu1 %v1917_v23  ;;  %499 = vmatpush.msrb.mxu0 %v1917_v23 }
  0xc1   :  { %474 = vmatpush.msrb.mxu3 %v1855_v50 }
  0xc2   :  { %374 = vmatpush.msrb.mxu1 %v1925_v24  ;;  %500 = vmatpush.msrb.mxu0 %v1925_v24 }
  0xc3   :  { %475 = vmatpush.msrb.mxu3 %v1859_v52 }
  0xc4   :  { %v1346_v34 = vpop.eup %1345  ;;  %375 = vmatpush.msrb.mxu1 %v1927_v29  ;;  %501 = vmatpush.msrb.mxu0 %v1927_v29 }
  0xc5   :  { %v260_v36 = vmul.f32 %v1346_v34, %v258_v30  ;;  %vm265_vm4 = vweird.f32 %v1346_v34  ;;  %v1348_v45 = vpop.eup %1347  ;;  %v102_v30 = vld [vmem:[%s2502_s0 + $0x8] sm:$0xff]  ;;  %476 = vmatpush.msrb.mxu3 %v1866_v54 }
  0xc6   :  { %vm266_vm7 = vmor %vm264_vm6, %vm265_vm4  ;;  %1306 = vmatmul.msk.f32.gmra.mxu0 %vm114_vm1, %v102_v30  ;;  %376 = vmatpush.msrb.mxu1 %v1936_v33 }
  0xc7   :  { %v261_v37 = vsub.f32 1.0, %v260_v36  ;;  %502 = vmatpush.msrb.mxu0 %v1936_v33  ;;  %477 = vmatpush.msrb.mxu3 %v1876_v56 }
  0xc9   :  { %v262_v39 = vmul.f32 %v1346_v34, %v261_v37  ;;  %478 = vmatpush.msrb.mxu3 %v1883_v58 }
  0xcb   :  { %v263_v42 = vadd.f32 %v1346_v34, %v262_v39  ;;  %479 = vmatpush.msrb.mxu3 %v1890_v60 }
  0xcd   :  { %v267_v44 = vsel %vm266_vm7, %v1346_v34, %v263_v42  ;;  %v1941_v34 = vld [vmem:[#allocation7] sm:$0xff]  ;;  %480 = vmatpush.msrb.mxu3 %v1897_v62 }
  0xce   :  { %v272_v46 = vsel %vm269_vm8, %v271_v43, %v267_v44  ;;  %2537 = vst [vmem:[#allocation22_spill] sm:$0xff] %v1941_v34  ;;  %377 = vmatpush.msrb.mxu1 %v1941_v34  ;;  %503 = vmatpush.msrb.mxu0 %v1941_v34 }
  0xcf   :  { %v1841_v47 = vsel %vm1835_vm5, %v1348_v45, %v272_v46  ;;  %378 = vmatmul.f32.vlgmr.msrb.gmra.mxu1 %v1655_v18  ;;  %481 = vmatpush.msrb.mxu3 %v1901_v4  ;;  %v2051_v45 = vld [vmem:[%s2508_s6] ss:$0 sm:$0xff] }
  0xd0   :  { %279 = vrot.lane.b32.xlu1 %v1841_v47, %s1656_s11  ;;  %275 = vrot.lane.b32.xlu0 %v1841_v47, %s1657_s12  ;;  %2538 = vst [vmem:[#allocation23_spill] sm:$0xff] %v2051_v45 }
  0xd1   :  { %541 = vmatpush.msra.mxu1 %v1722_v0  ;;  %667 = vmatpush.msra.mxu0 %v1722_v0 }
  0xd2   :  { %482 = vmatpush.msrb.mxu3 %v1908_v20 }
  0xd3   :  { %542 = vmatpush.msra.mxu1 %v1724_v1  ;;  %668 = vmatpush.msra.mxu0 %v1724_v1 }
  0xd4   :  { %483 = vmatpush.msrb.mxu3 %v1915_v22 }
  0xd5   :  { %543 = vmatpush.msra.mxu1 %v1728_v2  ;;  %669 = vmatpush.msra.mxu0 %v1728_v2 }
  0xd7   :  { %544 = vmatpush.msra.mxu1 %v1732_v3  ;;  %670 = vmatpush.msra.mxu0 %v1732_v3 }
  0xd8   :  { %277 = vrot.lane.b32.xlu0 %v1841_v47, %s1658_s13 }
  0xd9   :  { %545 = vmatpush.msra.mxu1 %v1741_v6  ;;  %671 = vmatpush.msra.mxu0 %v1741_v6 }
  0xdb   :  { %546 = vmatpush.msra.mxu1 %v1746_v7  ;;  %672 = vmatpush.msra.mxu0 %v1746_v7 }
  0xdd   :  { %547 = vmatpush.msra.mxu1 %v1750_v8  ;;  %673 = vmatpush.msra.mxu0 %v1750_v8 }
  0xdf   :  { %548 = vmatpush.msra.mxu1 %v1754_v9  ;;  %674 = vmatpush.msra.mxu0 %v1754_v9 }
  0xe1   :  { %549 = vmatpush.msra.mxu1 %v1758_v10  ;;  %675 = vmatpush.msra.mxu0 %v1758_v10 }
  0xe3   :  { %550 = vmatpush.msra.mxu1 %v1762_v11  ;;  %676 = vmatpush.msra.mxu0 %v1762_v11 }
  0xe5   :  { %551 = vmatpush.msra.mxu1 %v1766_v12  ;;  %677 = vmatpush.msra.mxu0 %v1766_v12 }
  0xe7   :  { %552 = vmatpush.msra.mxu1 %v1770_v13  ;;  %678 = vmatpush.msra.mxu0 %v1770_v13 }
  0xe9   :  { %553 = vmatpush.msra.mxu1 %v1774_v14  ;;  %679 = vmatpush.msra.mxu0 %v1774_v14 }
  0xeb   :  { %554 = vmatpush.msra.mxu1 %v1778_v15  ;;  %680 = vmatpush.msra.mxu0 %v1778_v15 }
  0xed   :  { %555 = vmatpush.msra.mxu1 %v1782_v16  ;;  %681 = vmatpush.msra.mxu0 %v1782_v16 }
  0xef   :  { %556 = vmatpush.msra.mxu1 %v1786_v17  ;;  %682 = vmatpush.msra.mxu0 %v1786_v17 }
  0xf1   :  { %720 = vmatpush.msrb.mxu1 %v1816_v25 }
  0xf3   :  { %721 = vmatpush.msrb.mxu1 %v1818_v26 }
  0xf5   :  { %722 = vmatpush.msrb.mxu1 %v1823_v28 }
  0xf7   :  { %723 = vmatpush.msrb.mxu1 %v1828_v31 }
  0xf9   :  { %724 = vmatpush.msrb.mxu1 %v1831_v32 }
  0xfb   :  { %725 = vmatpush.msrb.mxu1 %v1849_v48 }
  0xfd   :  { %726 = vmatpush.msrb.mxu1 %v1855_v50 }
  0xff   :  { %727 = vmatpush.msrb.mxu1 %v1859_v52 }
 0x101   :  { %728 = vmatpush.msrb.mxu1 %v1866_v54 }
 0x103   :  { %729 = vmatpush.msrb.mxu1 %v1876_v56 }
 0x105   :  { %730 = vmatpush.msrb.mxu1 %v1883_v58 }
 0x107   :  { %731 = vmatpush.msrb.mxu1 %v1890_v60 }
 0x109   :  { %732 = vmatpush.msrb.mxu1 %v1897_v62 }
 0x10b   :  { %733 = vmatpush.msrb.mxu1 %v1901_v4 }
 0x10d   :  { %734 = vmatpush.msrb.mxu1 %v1908_v20 }
 0x10f   :  { %735 = vmatpush.msrb.mxu1 %v1915_v22 }
 0x142   :  { %v276_v35 = vpop.permute.xlu0 %275  ;;  %v280_v40 = vpop.permute.xlu1 %279 }
 0x143   :  { %v281_v36 = vmul.f32 0.0, %v276_v35  ;;  %v163_v43 = vpop.f32.mrf.mxu0 }
 0x144   :  { %v164_v44 = vadd.f32 %v1813_v19, %v163_v43  ;;  %v103_v19 = vld [vmem:[%s2502_s0 + $0x10] sm:$0xff] }
 0x145   :  { %1307 = vmatmul.msk.f32.gmra.mxu0 %vm114_vm1, %v103_v19 }
 0x14a   :  { %v278_v18 = vpop.permute.xlu0 %277 }
 0x14b   :  { %v282_v37 = vmul.f32 %v278_v18, %v1841_v47 }
 0x14c   :  { %v379_v46 = vpop.f32.mrf.mxu1 }
 0x14d   :  { %v1971_v38 = vadd.f32 %v282_v37, %v281_v36 }
 0x14f   :  { %1349 = vtanh.f32 %v1971_v38 }
 0x155   :  { %v1350_v39 = vpop.eup %1349 }
 0x156   :  { %v285_v42 = vmul.f32 %v1350_v39, %v280_v40 }
 0x158   :  { %302 = vmatmul.f32.vlgmr.msra.gmra.mxu2 %v285_v42  ;;  %358 = vmatmul.f32.vlgmr.msra.gmra.mxu3 %v285_v42 }
 0x159   :  { %594 = vmatpush.msra.mxu2 %v1816_v25  ;;  %614 = vmatpush.msra.mxu3 %v1821_v27 }
 0x15b   :  { %595 = vmatpush.msra.mxu2 %v1818_v26  ;;  %615 = vmatpush.msra.mxu3 %v1851_v49 }
 0x15d   :  { %596 = vmatpush.msra.mxu2 %v1823_v28  ;;  %616 = vmatpush.msra.mxu3 %v1857_v51 }
 0x15f   :  { %597 = vmatpush.msra.mxu2 %v1828_v31  ;;  %617 = vmatpush.msra.mxu3 %v1861_v53 }
 0x161   :  { %598 = vmatpush.msra.mxu2 %v1831_v32  ;;  %618 = vmatpush.msra.mxu3 %v1868_v55 }
 0x163   :  { %599 = vmatpush.msra.mxu2 %v1849_v48  ;;  %619 = vmatpush.msra.mxu3 %v1878_v57 }
 0x165   :  { %600 = vmatpush.msra.mxu2 %v1855_v50  ;;  %620 = vmatpush.msra.mxu3 %v1885_v59 }
 0x167   :  { %601 = vmatpush.msra.mxu2 %v1859_v52  ;;  %621 = vmatpush.msra.mxu3 %v1892_v61 }
 0x169   :  { %602 = vmatpush.msra.mxu2 %v1866_v54  ;;  %622 = vmatpush.msra.mxu3 %v1899_v63 }
 0x16b   :  { %603 = vmatpush.msra.mxu2 %v1876_v56  ;;  %623 = vmatpush.msra.mxu3 %v1903_v5 }
 0x16d   :  { %604 = vmatpush.msra.mxu2 %v1883_v58  ;;  %624 = vmatpush.msra.mxu3 %v1910_v21 }
 0x16f   :  { %605 = vmatpush.msra.mxu2 %v1890_v60  ;;  %625 = vmatpush.msra.mxu3 %v1917_v23 }
 0x171   :  { %606 = vmatpush.msra.mxu2 %v1897_v62  ;;  %626 = vmatpush.msra.mxu3 %v1925_v24 }
 0x173   :  { %607 = vmatpush.msra.mxu2 %v1901_v4  ;;  %627 = vmatpush.msra.mxu3 %v1927_v29 }
 0x175   :  { %608 = vmatpush.msra.mxu2 %v1908_v20  ;;  %628 = vmatpush.msra.mxu3 %v1936_v33 }
 0x177   :  { %609 = vmatpush.msra.mxu2 %v1915_v22  ;;  %629 = vmatpush.msra.mxu3 %v1941_v34 }
 0x1db   :  { %v303_v47 = vpop.f32.mrf.mxu2  ;;  %v359_v30 = vpop.f32.mrf.mxu3 }
 0x1dc   :  { %v306_v35 = vadd.f32 %v303_v47, %v164_v44  ;;  %v360_v18 = vadd.f32 %v2051_v45, %v359_v30 }
 0x1de   :  { %v1314_v36 = vmul.f32 -1.442695, %v306_v35  ;;  %v382_v37 = vadd.f32 %v379_v46, %v360_v18  ;;  %v104_v46 = vld [vmem:[%s2502_s0 + $0x18] sm:$0xff] }
 0x1df   :  { %1308 = vmatmul.msk.f32.gmra.mxu0 %vm114_vm1, %v104_v46 }
 0x1e0   :  { %1351 = vpow2.f32 %v1314_v36  ;;  %v1315_v39 = vmul.f32 -1.442695, %v382_v37 }
 0x1e2   :  { %1353 = vpow2.f32 %v1315_v39 }
 0x1e6   :  { %v1352_v40 = vpop.eup %1351 }
 0x1e7   :  { %v311_v42 = vadd.f32 1.0, %v1352_v40 }
 0x1e8   :  { %v1354_v22 = vpop.eup %1353 }
 0x1e9   :  { %1355 = vrcp.f32 %v311_v42  ;;  %v387_v43 = vadd.f32 1.0, %v1354_v22  ;;  %v323_v39 = vand.u32 2147483648, %v311_v42  ;;  %v321_v22 = vand.u32 2147483647, %v311_v42 }
 0x1ea   :  { %vm317_vm10 = vweird.f32 %v311_v42 }
 0x1eb   :  { %1357 = vrcp.f32 %v387_v43  ;;  %v399_v19 = vand.u32 2147483648, %v387_v43  ;;  %v397_v34 = vand.u32 2147483647, %v387_v43  ;;  %v324_v16 = vor.u32 1.1754944e-38, %v323_v39 }
 0x1ec   :  { %1359 = vtanh.f32 %v306_v35  ;;  %vm322_vm13 = vcmp.eq.f32.partialorder %v321_v22, 8.507059e+37  ;;  %vm393_vm14 = vweird.f32 %v387_v43 }
 0x1ed   :  { %1361 = vtanh.f32 %v382_v37  ;;  %v400_v33 = vor.u32 1.1754944e-38, %v399_v19  ;;  %vm398_vm0 = vcmp.eq.f32.partialorder %v397_v34, 8.507059e+37 }
 0x1ef   :  { %v1356_v44 = vpop.eup %1355 }
 0x1f0   :  { %v313_v47 = vmul.f32 %v1356_v44, %v311_v42  ;;  %vm318_vm9 = vweird.f32 %v1356_v44 }
 0x1f1   :  { %v1358_v30 = vpop.eup %1357  ;;  %vm319_vm12 = vmor %vm317_vm10, %vm318_vm9 }
 0x1f2   :  { %v314_v18 = vsub.f32 1.0, %v313_v47  ;;  %v389_v36 = vmul.f32 %v1358_v30, %v387_v43  ;;  %vm394_vm11 = vweird.f32 %v1358_v30  ;;  %v1360_v35 = vpop.eup %1359 }
 0x1f3   :  { %vm395_vm15 = vmor %vm393_vm14, %vm394_vm11  ;;  %v1362_v42 = vpop.eup %1361 }
 0x1f4   :  { %v315_v40 = vmul.f32 %v1356_v44, %v314_v18  ;;  %v390_v45 = vsub.f32 1.0, %v389_v36 }
 0x1f6   :  { %v316_v17 = vadd.f32 %v1356_v44, %v315_v40  ;;  %v391_v20 = vmul.f32 %v1358_v30, %v390_v45 }
 0x1f8   :  { %v320_v4 = vsel %vm319_vm12, %v1356_v44, %v316_v17  ;;  %v392_v47 = vadd.f32 %v1358_v30, %v391_v20  ;;  %v107_v20 = vld [vmem:[%s2502_s0 + $0x30] sm:$0xff] }
 0x1f9   :  { %v325_v18 = vsel %vm322_vm13, %v324_v16, %v320_v4  ;;  %v105_v16 = vld [vmem:[%s2502_s0 + $0x20] sm:$0xff]  ;;  %v106_v4 = vld [vmem:[%s2502_s0 + $0x28] sm:$0xff] }
 0x1fa   :  { %v327_v46 = vsel %vm1835_vm5, %v1360_v35, %v325_v18  ;;  %v396_v37 = vsel %vm395_vm15, %v1358_v30, %v392_v47  ;;  %1309 = vmatmul.msk.f32.gmra.mxu0 %vm114_vm1, %v105_v16 }
 0x1fb   :  { %330 = vrot.lane.b32.xlu2 %v327_v46, %s1658_s13  ;;  %328 = vrot.lane.b32.xlu1 %v327_v46, %s1657_s12  ;;  %v401_v45 = vsel %vm398_vm0, %v400_v33, %v396_v37  ;;  %v108_v33 = vld [vmem:[%s2502_s0 + $0x38] sm:$0xff] }
 0x1fc   :  { %v403_v17 = vsel %vm1835_vm5, %v1362_v42, %v401_v45 }
 0x1fd   :  { %406 = vrot.lane.b32.xlu0 %v403_v17, %s1658_s13 }
 0x202   :  { %1310 = vmatmul.msk.f32.gmra.mxu0 %vm114_vm1, %v106_v4 }
 0x203   :  { %404 = vrot.lane.b32.xlu2 %v403_v17, %s1657_s12  ;;  %332 = vrot.lane.b32.xlu1 %v327_v46, %s1656_s11 }
 0x20a   :  { %1311 = vmatmul.msk.f32.gmra.mxu0 %vm114_vm1, %v107_v20  ;;  %v2547_v20 = vld [vmem:[#allocation23_spill] sm:$0xff] }
 0x20b   :  { %408 = vrot.lane.b32.xlu2 %v403_v17, %s1656_s11 }
 0x212   :  { %1312 = vmatmul.msk.f32.gmra.mxu0 %vm114_vm1, %v108_v33 }
 0x255   :  { %v331_v34 = vpop.permute.xlu2 %330 }
 0x256   :  { %v335_v30 = vmul.f32 %v331_v34, %v327_v46 }
 0x25d   :  { %v405_v43 = vpop.permute.xlu2 %404 }
 0x25e   :  { %v410_v40 = vmul.f32 0.0, %v405_v43 }
 0x265   :  { %v409_v45 = vpop.permute.xlu2 %408 }
 0x26d   :  { %v329_v44 = vpop.permute.xlu1 %328 }
 0x26e   :  { %v334_v36 = vmul.f32 %v329_v44, %v1971_v38 }
 0x26f   :  { %v407_v39 = vpop.permute.xlu0 %406 }
 0x270   :  { %v2089_v22 = vadd.f32 %v335_v30, %v334_v36  ;;  %v411_v19 = vmul.f32 %v407_v39, %v403_v17 }
 0x272   :  { %1363 = vtanh.f32 %v2089_v22  ;;  %v2092_v47 = vadd.f32 %v411_v19, %v410_v40 }
 0x274   :  { %1365 = vtanh.f32 %v2092_v47 }
 0x275   :  { %v333_v18 = vpop.permute.xlu1 %332 }
 0x278   :  { %v1364_v35 = vpop.eup %1363 }
 0x279   :  { %v338_v37 = vmul.f32 %v1364_v35, %v333_v18 }
 0x27a   :  { %v1366_v42 = vpop.eup %1365 }
 0x27b   :  { %431 = vmatmul.f32.vlgmr.msrb.gmra.mxu2 %v338_v37  ;;  %484 = vmatmul.f32.vlgmr.msrb.gmra.mxu3 %v338_v37  ;;  %v414_v46 = vmul.f32 %v1366_v42, %v409_v45 }
 0x27c   :  { %740 = vmatpush.msrb.mxu2 %v1821_v27  ;;  %793 = vmatpush.msrb.mxu3 %v1722_v0  ;;  %v2539_v0 = vld [vmem:[#allocation21_spill] sm:$0xff] }
 0x27d   :  { %504 = vmatmul.f32.vlgmr.msrb.gmra.mxu0 %v414_v46 }
 0x27e   :  { %741 = vmatpush.msrb.mxu2 %v1851_v49  ;;  %846 = vmatpush.msrb.mxu0 %v1816_v25 }
 0x27f   :  { %794 = vmatpush.msrb.mxu3 %v1724_v1  ;;  %v2540_v1 = vld [vmem:[#allocation18_spill] sm:$0xff] }
 0x280   :  { %742 = vmatpush.msrb.mxu2 %v1857_v51  ;;  %847 = vmatpush.msrb.mxu0 %v1818_v26 }
 0x281   :  { %795 = vmatpush.msrb.mxu3 %v1728_v2  ;;  %v2541_v2 = vld [vmem:[#allocation15_spill] sm:$0xff] }
 0x282   :  { %743 = vmatpush.msrb.mxu2 %v1861_v53  ;;  %848 = vmatpush.msrb.mxu0 %v1823_v28 }
 0x283   :  { %796 = vmatpush.msrb.mxu3 %v1732_v3  ;;  %v2542_v3 = vld [vmem:[#allocation22_spill] sm:$0xff] }
 0x284   :  { %744 = vmatpush.msrb.mxu2 %v1868_v55  ;;  %849 = vmatpush.msrb.mxu0 %v1828_v31 }
 0x285   :  { %797 = vmatpush.msrb.mxu3 %v1741_v6  ;;  %v2543_v6 = vld [vmem:[#allocation19_spill] sm:$0xff] }
 0x286   :  { %745 = vmatpush.msrb.mxu2 %v1878_v57  ;;  %850 = vmatpush.msrb.mxu0 %v1831_v32 }
 0x287   :  { %798 = vmatpush.msrb.mxu3 %v1746_v7  ;;  %v2544_v7 = vld [vmem:[#allocation16_spill] sm:$0xff] }
 0x288   :  { %746 = vmatpush.msrb.mxu2 %v1885_v59  ;;  %851 = vmatpush.msrb.mxu0 %v1849_v48 }
 0x289   :  { %799 = vmatpush.msrb.mxu3 %v1750_v8  ;;  %v2545_v8 = vld [vmem:[#allocation20_spill] sm:$0xff] }
 0x28a   :  { %747 = vmatpush.msrb.mxu2 %v1892_v61  ;;  %852 = vmatpush.msrb.mxu0 %v1855_v50 }
 0x28b   :  { %800 = vmatpush.msrb.mxu3 %v1754_v9  ;;  %v166_v9 = vpop.f32.mrf.mxu0 }
 0x28c   :  { %748 = vmatpush.msrb.mxu2 %v1899_v63  ;;  %853 = vmatpush.msrb.mxu0 %v1859_v52 }
 0x28d   :  { %801 = vmatpush.msrb.mxu3 %v1758_v10 }
 0x28e   :  { %749 = vmatpush.msrb.mxu2 %v1903_v5  ;;  %854 = vmatpush.msrb.mxu0 %v1866_v54 }
 0x28f   :  { %802 = vmatpush.msrb.mxu3 %v1762_v11 }
 0x290   :  { %750 = vmatpush.msrb.mxu2 %v1910_v21  ;;  %855 = vmatpush.msrb.mxu0 %v1876_v56 }
 0x291   :  { %803 = vmatpush.msrb.mxu3 %v1766_v12 }
 0x292   :  { %751 = vmatpush.msrb.mxu2 %v1917_v23  ;;  %856 = vmatpush.msrb.mxu0 %v1883_v58 }
 0x293   :  { %804 = vmatpush.msrb.mxu3 %v1770_v13  ;;  %v2143_v10 = vpop.f32.mrf.mxu0 }
 0x294   :  { %752 = vmatpush.msrb.mxu2 %v1925_v24  ;;  %857 = vmatpush.msrb.mxu0 %v1890_v60 }
 0x295   :  { %805 = vmatpush.msrb.mxu3 %v1774_v14 }
 0x296   :  { %753 = vmatpush.msrb.mxu2 %v1927_v29  ;;  %858 = vmatpush.msrb.mxu0 %v1897_v62 }
 0x297   :  { %806 = vmatpush.msrb.mxu3 %v1778_v15  ;;  %v2546_v15 = vld [vmem:[#allocation17_spill] sm:$0xff] }
 0x298   :  { %754 = vmatpush.msrb.mxu2 %v2539_v0  ;;  %859 = vmatpush.msrb.mxu0 %v2540_v1  ;;  %v167_v38 = vadd.f32 %v2546_v15, %v166_v9 }
 0x299   :  { %807 = vmatpush.msrb.mxu3 %v2541_v2 }
 0x29a   :  { %755 = vmatpush.msrb.mxu2 %v2542_v3  ;;  %860 = vmatpush.msrb.mxu0 %v2543_v6 }
 0x29b   :  { %808 = vmatpush.msrb.mxu3 %v2544_v7  ;;  %v2145_v11 = vpop.f32.mrf.mxu0 }
 0x29c   :  { %861 = vmatpush.msrb.mxu0 %v2545_v8 }
 0x2a3   :  { %v2147_v12 = vpop.f32.mrf.mxu0 }
 0x2ab   :  { %v2149_v13 = vpop.f32.mrf.mxu0 }
 0x2b3   :  { %v2151_v14 = vpop.f32.mrf.mxu0 }
 0x2fa   :  { %v505_v34 = vpop.f32.mrf.mxu0 }
 0x2fe   :  { %v432_v17 = vpop.f32.mrf.mxu2  ;;  %v485_v16 = vpop.f32.mrf.mxu3 }
 0x2ff   :  { %v435_v4 = vadd.f32 %v432_v17, %v167_v38  ;;  %v486_v33 = vadd.f32 %v2547_v20, %v485_v16 }
 0x301   :  { %v1316_v43 = vmul.f32 -1.442695, %v435_v4  ;;  %v508_v44 = vadd.f32 %v505_v34, %v486_v33 }
 0x303   :  { %1367 = vpow2.f32 %v1316_v43  ;;  %v1317_v30 = vmul.f32 -1.442695, %v508_v44 }
 0x305   :  { %1369 = vpow2.f32 %v1317_v30 }
 0x309   :  { %v1368_v36 = vpop.eup %1367 }
 0x30a   :  { %v440_v39 = vadd.f32 1.0, %v1368_v36 }
 0x30b   :  { %v1370_v40 = vpop.eup %1369 }
 0x30c   :  { %1371 = vrcp.f32 %v440_v39  ;;  %v513_v19 = vadd.f32 1.0, %v1370_v40  ;;  %v452_v46 = vand.u32 2147483648, %v440_v39  ;;  %v450_v7 = vand.u32 2147483647, %v440_v39 }
 0x30d   :  { %vm446_vm2 = vweird.f32 %v440_v39 }
 0x30e   :  { %1373 = vrcp.f32 %v513_v19  ;;  %v525_v38 = vand.u32 2147483648, %v513_v19  ;;  %v523_v33 = vand.u32 2147483647, %v513_v19  ;;  %v453_v34 = vor.u32 1.1754944e-38, %v452_v46 }
 0x30f   :  { %1375 = vtanh.f32 %v435_v4  ;;  %vm451_vm6 = vcmp.eq.f32.partialorder %v450_v7, 8.507059e+37  ;;  %vm519_vm7 = vweird.f32 %v513_v19 }
 0x310   :  { %1377 = vtanh.f32 %v508_v44  ;;  %v526_v40 = vor.u32 1.1754944e-38, %v525_v38  ;;  %vm524_vm9 = vcmp.eq.f32.partialorder %v523_v33, 8.507059e+37 }
 0x312   :  { %v1372_v35 = vpop.eup %1371 }
 0x313   :  { %v442_v18 = vmul.f32 %v1372_v35, %v440_v39  ;;  %vm447_vm1 = vweird.f32 %v1372_v35 }
 0x314   :  { %v1374_v37 = vpop.eup %1373  ;;  %vm448_vm4 = vmor %vm446_vm2, %vm447_vm1 }
 0x315   :  { %v443_v42 = vsub.f32 1.0, %v442_v18  ;;  %v515_v45 = vmul.f32 %v1374_v37, %v513_v19  ;;  %vm520_vm3 = vweird.f32 %v1374_v37  ;;  %v1376_v36 = vpop.eup %1375 }
 0x316   :  { %vm521_vm8 = vmor %vm519_vm7, %vm520_vm3  ;;  %v1378_v39 = vpop.eup %1377 }
 0x317   :  { %v444_v2 = vmul.f32 %v1372_v35, %v443_v42  ;;  %v516_v9 = vsub.f32 1.0, %v515_v45 }
 0x319   :  { %v445_v17 = vadd.f32 %v1372_v35, %v444_v2  ;;  %v517_v16 = vmul.f32 %v1374_v37, %v516_v9 }
 0x31b   :  { %v449_v43 = vsel %vm448_vm4, %v1372_v35, %v445_v17  ;;  %v518_v30 = vadd.f32 %v1374_v37, %v517_v16 }
 0x31c   :  { %v454_v4 = vsel %vm451_vm6, %v453_v34, %v449_v43 }
 0x31d   :  { %v456_v18 = vsel %vm1835_vm5, %v1376_v36, %v454_v4  ;;  %v522_v44 = vsel %vm521_vm8, %v1374_v37, %v518_v30  ;;  %v2178_v30 = vld [vmem:[#allocation2 + $0x70] sm:$0xff]  ;;  %v2182_v4 = vld [vmem:[#allocation2 + $0x68] sm:$0xff] }
 0x31e   :  { %459 = vrot.lane.b32.xlu1 %v456_v18, %s1658_s13  ;;  %457 = vrot.lane.b32.xlu0 %v456_v18, %s1657_s12  ;;  %v527_v42 = vsel %vm524_vm9, %v526_v40, %v522_v44 }
 0x31f   :  { %v529_v35 = vsel %vm1835_vm5, %v1378_v39, %v527_v42 }
 0x320   :  { %530 = vrot.lane.b32.xlu2 %v529_v35, %s1657_s12 }
 0x326   :  { %461 = vrot.lane.b32.xlu1 %v456_v18, %s1656_s11  ;;  %532 = vrot.lane.b32.xlu0 %v529_v35, %s1658_s13 }
 0x328   :  { %534 = vrot.lane.b32.xlu2 %v529_v35, %s1656_s11 }
 0x37a   :  { %v531_v7 = vpop.permute.xlu2 %530 }
 0x37b   :  { %v536_v38 = vmul.f32 %v531_v7, %v2092_v47 }
 0x382   :  { %v535_v36 = vpop.permute.xlu2 %534 }
 0x390   :  { %v460_v19 = vpop.permute.xlu1 %459  ;;  %v458_v37 = vpop.permute.xlu0 %457 }
 0x391   :  { %v464_v45 = vmul.f32 %v460_v19, %v456_v18  ;;  %v463_v46 = vmul.f32 %v458_v37, %v2089_v22  ;;  %v2174_v22 = vld [vmem:[#allocation2 + $0x78] sm:$0xff] }
 0x393   :  { %v2166_v2 = vadd.f32 %v464_v45, %v463_v46 }
 0x395   :  { %1379 = vtanh.f32 %v2166_v2 }
 0x398   :  { %v533_v9 = vpop.permute.xlu0 %532  ;;  %v462_v33 = vpop.permute.xlu1 %461 }
 0x399   :  { %v537_v17 = vmul.f32 %v533_v9, %v529_v35 }
 0x39b   :  { %v1380_v16 = vpop.eup %1379  ;;  %v2170_v34 = vadd.f32 %v537_v17, %v536_v38 }
 0x39c   :  { %v467_v43 = vmul.f32 %v1380_v16, %v462_v33 }
 0x39d   :  { %1381 = vtanh.f32 %v2170_v34 }
 0x39e   :  { %557 = vmatmul.f32.vlgmr.msra.gmra.mxu1 %v467_v43  ;;  %610 = vmatmul.f32.vlgmr.msra.gmra.mxu2 %v467_v43 }
 0x39f   :  { %866 = vmatpush.msra.mxu1 %v1821_v27  ;;  %919 = vmatpush.msra.mxu2 %v2174_v22  ;;  %v2186_v27 = vld [vmem:[#allocation2 + $0x60] sm:$0xff] }
 0x3a1   :  { %867 = vmatpush.msra.mxu1 %v1851_v49  ;;  %920 = vmatpush.msra.mxu2 %v2178_v30  ;;  %v2191_v49 = vld [vmem:[#allocation2 + $0x58] sm:$0xff] }
 0x3a3   :  { %v1382_v47 = vpop.eup %1381  ;;  %868 = vmatpush.msra.mxu1 %v1857_v51  ;;  %921 = vmatpush.msra.mxu2 %v2182_v4  ;;  %v2196_v51 = vld [vmem:[#allocation2 + $0x50] sm:$0xff] }
 0x3a4   :  { %v540_v40 = vmul.f32 %v1382_v47, %v535_v36 }
 0x3a5   :  { %869 = vmatpush.msra.mxu1 %v1861_v53  ;;  %922 = vmatpush.msra.mxu2 %v2186_v27  ;;  %v2201_v53 = vld [vmem:[#allocation2 + $0x48] sm:$0xff] }
 0x3a6   :  { %630 = vmatmul.f32.vlgmr.msra.gmra.mxu3 %v540_v40 }
 0x3a7   :  { %870 = vmatpush.msra.mxu1 %v1868_v55  ;;  %972 = vmatpush.msra.mxu3 %v1816_v25  ;;  %v2206_v25 = vld [vmem:[#allocation2 + $0x40] sm:$0xff]  ;;  %v170_v55 = vadd.f32 %v2546_v15, %v2143_v10 }
 0x3a8   :  { %923 = vmatpush.msra.mxu2 %v2191_v49 }
 0x3a9   :  { %871 = vmatpush.msra.mxu1 %v1878_v57  ;;  %973 = vmatpush.msra.mxu3 %v1818_v26  ;;  %v2211_v26 = vld [vmem:[#allocation2 + $0x38] sm:$0xff] }
 0x3aa   :  { %924 = vmatpush.msra.mxu2 %v2196_v51 }
 0x3ab   :  { %872 = vmatpush.msra.mxu1 %v1885_v59  ;;  %974 = vmatpush.msra.mxu3 %v1823_v28  ;;  %v2216_v28 = vld [vmem:[#allocation2 + $0x30] sm:$0xff] }
 0x3ac   :  { %925 = vmatpush.msra.mxu2 %v2201_v53 }
 0x3ad   :  { %873 = vmatpush.msra.mxu1 %v1892_v61  ;;  %975 = vmatpush.msra.mxu3 %v1828_v31  ;;  %v2221_v31 = vld [vmem:[#allocation2 + $0x28] sm:$0xff] }
 0x3ae   :  { %926 = vmatpush.msra.mxu2 %v2206_v25 }
 0x3af   :  { %874 = vmatpush.msra.mxu1 %v1899_v63  ;;  %976 = vmatpush.msra.mxu3 %v1831_v32  ;;  %v2226_v32 = vld [vmem:[#allocation2 + $0x20] sm:$0xff] }
 0x3b0   :  { %927 = vmatpush.msra.mxu2 %v2211_v26 }
 0x3b1   :  { %875 = vmatpush.msra.mxu1 %v1903_v5  ;;  %977 = vmatpush.msra.mxu3 %v1849_v48  ;;  %v2231_v48 = vld [vmem:[#allocation2 + $0x18] sm:$0xff] }
 0x3b2   :  { %928 = vmatpush.msra.mxu2 %v2216_v28 }
 0x3b3   :  { %876 = vmatpush.msra.mxu1 %v1910_v21  ;;  %978 = vmatpush.msra.mxu3 %v1855_v50  ;;  %v2236_v50 = vld [vmem:[#allocation2 + $0x10] sm:$0xff] }
 0x3b4   :  { %929 = vmatpush.msra.mxu2 %v2221_v31 }
 0x3b5   :  { %877 = vmatpush.msra.mxu1 %v1917_v23  ;;  %979 = vmatpush.msra.mxu3 %v1859_v52  ;;  %v2241_v52 = vld [vmem:[#allocation2 + $0x8] sm:$0xff] }
 0x3b6   :  { %930 = vmatpush.msra.mxu2 %v2226_v32 }
 0x3b7   :  { %878 = vmatpush.msra.mxu1 %v1925_v24  ;;  %980 = vmatpush.msra.mxu3 %v1866_v54  ;;  %v2246_v54 = vld [vmem:[#allocation2] sm:$0xff] }
 0x3b8   :  { %931 = vmatpush.msra.mxu2 %v2231_v48 }
 0x3b9   :  { %879 = vmatpush.msra.mxu1 %v1927_v29  ;;  %981 = vmatpush.msra.mxu3 %v1876_v56 }
 0x3ba   :  { %932 = vmatpush.msra.mxu2 %v2236_v50 }
 0x3bb   :  { %880 = vmatpush.msra.mxu1 %v2539_v0  ;;  %982 = vmatpush.msra.mxu3 %v1883_v58 }
 0x3bc   :  { %933 = vmatpush.msra.mxu2 %v2241_v52 }
 0x3bd   :  { %881 = vmatpush.msra.mxu1 %v2542_v3  ;;  %983 = vmatpush.msra.mxu3 %v1890_v60 }
 0x3be   :  { %934 = vmatpush.msra.mxu2 %v2246_v54 }
 0x3bf   :  { %984 = vmatpush.msra.mxu3 %v1897_v62 }
 0x3c1   :  { %985 = vmatpush.msra.mxu3 %v2540_v1 }
 0x3c3   :  { %986 = vmatpush.msra.mxu3 %v2543_v6 }
 0x3c5   :  { %987 = vmatpush.msra.mxu3 %v2545_v8 }
 0x41b   :  { %v558_v56 = vpop.f32.mrf.mxu1 }
 0x41c   :  { %v561_v57 = vadd.f32 %v558_v56, %v170_v55 }
 0x41e   :  { %v1318_v58 = vmul.f32 -1.442695, %v561_v57 }
 0x420   :  { %1383 = vpow2.f32 %v1318_v58 }
 0x421   :  { %v611_v59 = vpop.f32.mrf.mxu2 }
 0x422   :  { %v612_v44 = vadd.f32 %v2547_v20, %v611_v59 }
 0x426   :  { %v1384_v60 = vpop.eup %1383 }
 0x427   :  { %v566_v18 = vadd.f32 1.0, %v1384_v60 }
 0x429   :  { %1385 = vrcp.f32 %v566_v18  ;;  %v631_v62 = vpop.f32.mrf.mxu3  ;;  %v578_v35 = vand.u32 2147483648, %v566_v18  ;;  %v576_v19 = vand.u32 2147483647, %v566_v18  ;;  %vm572_vm11 = vweird.f32 %v566_v18 }
 0x42a   :  { %v634_v39 = vadd.f32 %v631_v62, %v612_v44 }
 0x42b   :  { %v579_v46 = vor.u32 1.1754944e-38, %v578_v35  ;;  %vm577_vm13 = vcmp.eq.f32.partialorder %v576_v19, 8.507059e+37 }
 0x42c   :  { %v1319_v1 = vmul.f32 -1.442695, %v634_v39 }
 0x42e   :  { %1387 = vpow2.f32 %v1319_v1 }
 0x42f   :  { %v1386_v6 = vpop.eup %1385  ;;  %1389 = vtanh.f32 %v561_v57 }
 0x430   :  { %v568_v42 = vmul.f32 %v1386_v6, %v566_v18  ;;  %vm573_vm10 = vweird.f32 %v1386_v6 }
 0x431   :  { %vm574_vm12 = vmor %vm572_vm11, %vm573_vm10 }
 0x432   :  { %v569_v8 = vsub.f32 1.0, %v568_v42 }
 0x434   :  { %v1388_v10 = vpop.eup %1387  ;;  %v570_v15 = vmul.f32 %v1386_v6, %v569_v8 }
 0x435   :  { %v639_v37 = vadd.f32 1.0, %v1388_v10  ;;  %v1390_v9 = vpop.eup %1389 }
 0x436   :  { %v571_v45 = vadd.f32 %v1386_v6, %v570_v15 }
 0x437   :  { %1391 = vrcp.f32 %v639_v37  ;;  %v651_v47 = vand.u32 2147483648, %v639_v37  ;;  %v649_v40 = vand.u32 2147483647, %v639_v37  ;;  %vm645_vm15 = vweird.f32 %v639_v37 }
 0x438   :  { %v575_v7 = vsel %vm574_vm12, %v1386_v6, %v571_v45  ;;  %1393 = vtanh.f32 %v634_v39  ;;  %v2277_v45 = vld [vmem:[#allocation7 + $0x70] sm:$0xff] }
 0x439   :  { %v580_v38 = vsel %vm577_vm13, %v579_v46, %v575_v7  ;;  %v652_v56 = vor.u32 1.1754944e-38, %v651_v47  ;;  %vm650_vm1 = vcmp.eq.f32.partialorder %v649_v40, 8.507059e+37  ;;  %v2282_v46 = vld [vmem:[#allocation7 + $0x68] sm:$0xff] }
 0x43a   :  { %v582_v17 = vsel %vm1835_vm5, %v1390_v9, %v580_v38  ;;  %v2294_v9 = vld [vmem:[#allocation7 + $0x50] sm:$0xff]  ;;  %v2298_v38 = vld [vmem:[#allocation7 + $0x48] sm:$0xff] }
 0x43b   :  { %585 = vrot.lane.b32.xlu1 %v582_v17, %s1658_s13  ;;  %583 = vrot.lane.b32.xlu0 %v582_v17, %s1657_s12 }
 0x43d   :  { %v1392_v16 = vpop.eup %1391 }
 0x43e   :  { %v641_v33 = vmul.f32 %v1392_v16, %v639_v37  ;;  %vm646_vm14 = vweird.f32 %v1392_v16  ;;  %v1394_v58 = vpop.eup %1393  ;;  %v2271_v37 = vld [vmem:[#allocation7 + $0x78] sm:$0xff] }
 0x43f   :  { %vm647_vm0 = vmor %vm645_vm15, %vm646_vm14 }
 0x440   :  { %v642_v43 = vsub.f32 1.0, %v641_v33 }
 0x442   :  { %v643_v36 = vmul.f32 %v1392_v16, %v642_v43 }
 0x443   :  { %587 = vrot.lane.b32.xlu1 %v582_v17, %s1656_s11 }
 0x444   :  { %v644_v55 = vadd.f32 %v1392_v16, %v643_v36 }
 0x446   :  { %v648_v57 = vsel %vm647_vm0, %v1392_v16, %v644_v55 }
 0x447   :  { %v653_v59 = vsel %vm650_vm1, %v652_v56, %v648_v57 }
 0x448   :  { %v655_v60 = vsel %vm1835_vm5, %v1394_v58, %v653_v59 }
 0x449   :  { %658 = vrot.lane.b32.xlu0 %v655_v60, %s1658_s13  ;;  %656 = vrot.lane.b32.xlu2 %v655_v60, %s1657_s12 }
 0x451   :  { %660 = vrot.lane.b32.xlu2 %v655_v60, %s1656_s11 }
 0x4a3   :  { %v657_v8 = vpop.permute.xlu2 %656 }
 0x4a4   :  { %v662_v15 = vmul.f32 %v657_v8, %v2170_v34  ;;  %v2286_v34 = vld [vmem:[#allocation7 + $0x60] sm:$0xff] }
 0x4ab   :  { %v661_v7 = vpop.permute.xlu2 %660 }
 0x4ad   :  { %v586_v18 = vpop.permute.xlu1 %585  ;;  %v584_v44 = vpop.permute.xlu0 %583 }
 0x4ae   :  { %v590_v62 = vmul.f32 %v586_v18, %v582_v17  ;;  %v589_v39 = vmul.f32 %v584_v44, %v2166_v2 }
 0x4b0   :  { %v2267_v1 = vadd.f32 %v590_v62, %v589_v39 }
 0x4b2   :  { %1395 = vtanh.f32 %v2267_v1 }
 0x4b5   :  { %v588_v42 = vpop.permute.xlu1 %587 }
 0x4b8   :  { %v1396_v6 = vpop.eup %1395 }
 0x4b9   :  { %v593_v35 = vmul.f32 %v1396_v6, %v588_v42 }
 0x4bb   :  { %683 = vmatmul.f32.vlgmr.msra.gmra.mxu0 %v593_v35  ;;  %736 = vmatmul.f32.vlgmr.msrb.gmra.mxu1 %v593_v35  ;;  %v659_v10 = vpop.permute.xlu0 %658 }
 0x4bc   :  { %v663_v19 = vmul.f32 %v659_v10, %v655_v60  ;;  %992 = vmatpush.msra.mxu0 %v2271_v37  ;;  %1045 = vmatpush.msrb.mxu1 %v2174_v22  ;;  %v2290_v22 = vld [vmem:[#allocation7 + $0x58] sm:$0xff] }
 0x4be   :  { %v2275_v2 = vadd.f32 %v663_v19, %v662_v15  ;;  %993 = vmatpush.msra.mxu0 %v2277_v45  ;;  %1046 = vmatpush.msrb.mxu1 %v2178_v30 }
 0x4c0   :  { %1397 = vtanh.f32 %v2275_v2  ;;  %994 = vmatpush.msra.mxu0 %v2282_v46  ;;  %1047 = vmatpush.msrb.mxu1 %v2182_v4 }
 0x4c2   :  { %995 = vmatpush.msra.mxu0 %v2286_v34  ;;  %1048 = vmatpush.msrb.mxu1 %v2186_v27  ;;  %v2303_v27 = vld [vmem:[#allocation5 + $0x78] sm:$0xff] }
 0x4c4   :  { %996 = vmatpush.msra.mxu0 %v2290_v22  ;;  %1049 = vmatpush.msrb.mxu1 %v2191_v49  ;;  %v2308_v49 = vld [vmem:[#allocation5 + $0x70] sm:$0xff] }
 0x4c6   :  { %v1398_v30 = vpop.eup %1397  ;;  %997 = vmatpush.msra.mxu0 %v2294_v9  ;;  %1050 = vmatpush.msrb.mxu1 %v2196_v51  ;;  %v2313_v51 = vld [vmem:[#allocation5 + $0x68] sm:$0xff] }
 0x4c7   :  { %v666_v4 = vmul.f32 %v1398_v30, %v661_v7 }
 0x4c8   :  { %998 = vmatpush.msra.mxu0 %v2298_v38  ;;  %1051 = vmatpush.msrb.mxu1 %v2201_v53  ;;  %v2350_v53 = vld [vmem:[#allocation5 + $0x28] sm:$0xff] }
 0x4c9   :  { %756 = vmatmul.f32.vlgmr.msrb.gmra.mxu2 %v666_v4 }
 0x4ca   :  { %999 = vmatpush.msra.mxu0 %v1892_v61  ;;  %1098 = vmatpush.msrb.mxu2 %v2303_v27  ;;  %v2318_v61 = vld [vmem:[#allocation5 + $0x60] sm:$0xff] }
 0x4cb   :  { %1052 = vmatpush.msrb.mxu1 %v2206_v25  ;;  %v2356_v25 = vld [vmem:[#allocation5 + $0x18] sm:$0xff] }
 0x4cc   :  { %1000 = vmatpush.msra.mxu0 %v1899_v63  ;;  %1099 = vmatpush.msrb.mxu2 %v2308_v49  ;;  %v2323_v63 = vld [vmem:[#allocation5 + $0x58] sm:$0xff] }
 0x4cd   :  { %1053 = vmatpush.msrb.mxu1 %v2211_v26  ;;  %v2362_v26 = vld [vmem:[#allocation5 + $0x8] sm:$0xff] }
 0x4ce   :  { %1001 = vmatpush.msra.mxu0 %v1903_v5  ;;  %1100 = vmatpush.msrb.mxu2 %v2313_v51  ;;  %v2328_v5 = vld [vmem:[#allocation5 + $0x50] sm:$0xff] }
 0x4cf   :  { %1054 = vmatpush.msrb.mxu1 %v2216_v28  ;;  %v2365_v28 = vld [vmem:[#allocation5] sm:$0xff] }
 0x4d0   :  { %1002 = vmatpush.msra.mxu0 %v1910_v21  ;;  %1101 = vmatpush.msrb.mxu2 %v2318_v61  ;;  %v2333_v21 = vld [vmem:[#allocation5 + $0x48] sm:$0xff] }
 0x4d1   :  { %1055 = vmatpush.msrb.mxu1 %v2221_v31  ;;  %v2371_v31 = vld [vmem:[%s2505_s3] ss:$0 sm:$0xff] }
 0x4d2   :  { %1003 = vmatpush.msra.mxu0 %v1917_v23  ;;  %1102 = vmatpush.msrb.mxu2 %v2323_v63  ;;  %v2338_v23 = vld [vmem:[#allocation5 + $0x40] sm:$0xff] }
 0x4d3   :  { %1056 = vmatpush.msrb.mxu1 %v2226_v32  ;;  %v173_v32 = vadd.f32 %v2371_v31, %v2145_v11 }
 0x4d4   :  { %1004 = vmatpush.msra.mxu0 %v1925_v24  ;;  %1103 = vmatpush.msrb.mxu2 %v2328_v5  ;;  %v2343_v24 = vld [vmem:[#allocation5 + $0x38] sm:$0xff] }
 0x4d5   :  { %1057 = vmatpush.msrb.mxu1 %v2231_v48 }
 0x4d6   :  { %1005 = vmatpush.msra.mxu0 %v1927_v29  ;;  %1104 = vmatpush.msrb.mxu2 %v2333_v21  ;;  %v2347_v29 = vld [vmem:[#allocation5 + $0x30] sm:$0xff] }
 0x4d7   :  { %1058 = vmatpush.msrb.mxu1 %v2236_v50 }
 0x4d8   :  { %1006 = vmatpush.msra.mxu0 %v2539_v0  ;;  %1105 = vmatpush.msrb.mxu2 %v2338_v23  ;;  %v2353_v0 = vld [vmem:[#allocation5 + $0x20] sm:$0xff] }
 0x4d9   :  { %1059 = vmatpush.msrb.mxu1 %v2241_v52 }
 0x4da   :  { %1007 = vmatpush.msra.mxu0 %v2542_v3  ;;  %1106 = vmatpush.msrb.mxu2 %v2343_v24  ;;  %v2359_v3 = vld [vmem:[#allocation5 + $0x10] sm:$0xff] }
 0x4db   :  { %1060 = vmatpush.msrb.mxu1 %v2246_v54 }
 0x4dc   :  { %1107 = vmatpush.msrb.mxu2 %v2347_v29 }
 0x4de   :  { %1108 = vmatpush.msrb.mxu2 %v2350_v53 }
 0x4e0   :  { %1109 = vmatpush.msrb.mxu2 %v2353_v0 }
 0x4e2   :  { %1110 = vmatpush.msrb.mxu2 %v2356_v25 }
 0x4e4   :  { %1111 = vmatpush.msrb.mxu2 %v2359_v3 }
 0x4e6   :  { %1112 = vmatpush.msrb.mxu2 %v2362_v26 }
 0x4e8   :  { %1113 = vmatpush.msrb.mxu2 %v2365_v28 }
 0x538   :  { %v684_v48 = vpop.f32.mrf.mxu0  ;;  %v737_v16 = vpop.f32.mrf.mxu1 }
 0x539   :  { %v687_v50 = vadd.f32 %v684_v48, %v173_v32  ;;  %v738_v33 = vadd.f32 %v2547_v20, %v737_v16 }
 0x53b   :  { %v1320_v52 = vmul.f32 -1.442695, %v687_v50 }
 0x53d   :  { %1399 = vpow2.f32 %v1320_v52 }
 0x543   :  { %v1400_v54 = vpop.eup %1399 }
 0x544   :  { %v692_v17 = vadd.f32 1.0, %v1400_v54 }
 0x546   :  { %1401 = vrcp.f32 %v692_v17  ;;  %v704_v57 = vand.u32 2147483648, %v692_v17  ;;  %v702_v58 = vand.u32 2147483647, %v692_v17  ;;  %vm698_vm3 = vweird.f32 %v692_v17 }
 0x547   :  { %1403 = vtanh.f32 %v687_v50 }
 0x548   :  { %v705_v60 = vor.u32 1.1754944e-38, %v704_v57  ;;  %vm703_vm6 = vcmp.eq.f32.partialorder %v702_v58, 8.507059e+37 }
 0x54c   :  { %v1402_v43 = vpop.eup %1401  ;;  %v757_v47 = vpop.f32.mrf.mxu2 }
 0x54d   :  { %v760_v36 = vadd.f32 %v757_v47, %v738_v33  ;;  %v694_v40 = vmul.f32 %v1402_v43, %v692_v17  ;;  %vm699_vm2 = vweird.f32 %v1402_v43  ;;  %v1404_v44 = vpop.eup %1403 }
 0x54e   :  { %vm700_vm4 = vmor %vm698_vm3, %vm699_vm2 }
 0x54f   :  { %v1321_v55 = vmul.f32 -1.442695, %v760_v36  ;;  %v695_v56 = vsub.f32 1.0, %v694_v40 }
 0x551   :  { %1405 = vpow2.f32 %v1321_v55  ;;  %v696_v11 = vmul.f32 %v1402_v43, %v695_v56 }
 0x553   :  { %v697_v59 = vadd.f32 %v1402_v43, %v696_v11 }
 0x555   :  { %v701_v18 = vsel %vm700_vm4, %v1402_v43, %v697_v59 }
 0x556   :  { %v706_v20 = vsel %vm703_vm6, %v705_v60, %v701_v18 }
 0x557   :  { %v1406_v62 = vpop.eup %1405  ;;  %v708_v39 = vsel %vm1835_vm5, %v1404_v44, %v706_v20 }
 0x558   :  { %v765_v6 = vadd.f32 1.0, %v1406_v62  ;;  %713 = vrot.lane.b32.xlu2 %v708_v39, %s1656_s11  ;;  %711 = vrot.lane.b32.xlu1 %v708_v39, %s1658_s13 }
 0x559   :  { %709 = vrot.lane.b32.xlu0 %v708_v39, %s1657_s12 }
 0x55a   :  { %1407 = vrcp.f32 %v765_v6  ;;  %v777_v10 = vand.u32 2147483648, %v765_v6  ;;  %v775_v19 = vand.u32 2147483647, %v765_v6  ;;  %vm771_vm8 = vweird.f32 %v765_v6 }
 0x55b   :  { %1409 = vtanh.f32 %v760_v36 }
 0x55c   :  { %v778_v7 = vor.u32 1.1754944e-38, %v777_v10  ;;  %vm776_vm10 = vcmp.eq.f32.partialorder %v775_v19, 8.507059e+37 }
 0x560   :  { %v1408_v42 = vpop.eup %1407 }
 0x561   :  { %v767_v8 = vmul.f32 %v1408_v42, %v765_v6  ;;  %vm772_vm7 = vweird.f32 %v1408_v42  ;;  %v1410_v32 = vpop.eup %1409 }
 0x562   :  { %vm773_vm9 = vmor %vm771_vm8, %vm772_vm7 }
 0x563   :  { %v768_v35 = vsub.f32 1.0, %v767_v8 }
 0x565   :  { %v769_v15 = vmul.f32 %v1408_v42, %v768_v35 }
 0x567   :  { %v770_v30 = vadd.f32 %v1408_v42, %v769_v15 }
 0x569   :  { %v774_v4 = vsel %vm773_vm9, %v1408_v42, %v770_v30 }
 0x56a   :  { %v779_v48 = vsel %vm776_vm10, %v778_v7, %v774_v4 }
 0x56b   :  { %v781_v50 = vsel %vm1835_vm5, %v1410_v32, %v779_v48 }
 0x56c   :  { %786 = vrot.lane.b32.xlu2 %v781_v50, %s1656_s11  ;;  %784 = vrot.lane.b32.xlu1 %v781_v50, %s1658_s13 }
 0x56d   :  { %782 = vrot.lane.b32.xlu0 %v781_v50, %s1657_s12 }
 0x5b2   :  { %v714_v47 = vpop.permute.xlu2 %713 }
 0x5ca   :  { %v712_v52 = vpop.permute.xlu1 %711 }
 0x5cb   :  { %v716_v54 = vmul.f32 %v712_v52, %v708_v39  ;;  %v710_v17 = vpop.permute.xlu0 %709 }
 0x5cc   :  { %v715_v16 = vmul.f32 %v710_v17, %v2267_v1 }
 0x5ce   :  { %v2387_v33 = vadd.f32 %v716_v54, %v715_v16 }
 0x5d0   :  { %1411 = vtanh.f32 %v2387_v33 }
 0x5d6   :  { %v1412_v43 = vpop.eup %1411 }
 0x5d7   :  { %v719_v36 = vmul.f32 %v1412_v43, %v714_v47 }
 0x5d9   :  { %809 = vmatmul.f32.vlgmr.msrb.gmra.mxu3 %v719_v36  ;;  %862 = vmatmul.f32.vlgmr.msrb.gmra.mxu0 %v719_v36 }
 0x5da   :  { %1118 = vmatpush.msrb.mxu3 %v2271_v37  ;;  %1171 = vmatpush.msrb.mxu0 %v2303_v27 }
 0x5dc   :  { %1119 = vmatpush.msrb.mxu3 %v2277_v45  ;;  %1172 = vmatpush.msrb.mxu0 %v2308_v49  ;;  %v787_v49 = vpop.permute.xlu2 %786 }
 0x5de   :  { %v785_v40 = vpop.permute.xlu1 %784  ;;  %1120 = vmatpush.msrb.mxu3 %v2282_v46  ;;  %1173 = vmatpush.msrb.mxu0 %v2313_v51  ;;  %v1512_v51 = vld [vmem:[#allocation7 + $0x38] sm:$0xff] }
 0x5df   :  { %v789_v1 = vmul.f32 %v785_v40, %v781_v50  ;;  %v783_v55 = vpop.permute.xlu0 %782 }
 0x5e0   :  { %v788_v56 = vmul.f32 %v783_v55, %v2275_v2  ;;  %1121 = vmatpush.msrb.mxu3 %v2286_v34  ;;  %1174 = vmatpush.msrb.mxu0 %v2318_v61  ;;  %v1511_v2 = vld [vmem:[#allocation7 + $0x40] sm:$0xff] }
 0x5e2   :  { %v2399_v57 = vadd.f32 %v789_v1, %v788_v56  ;;  %1122 = vmatpush.msrb.mxu3 %v2290_v22  ;;  %1175 = vmatpush.msrb.mxu0 %v2323_v63  ;;  %v1513_v63 = vld [vmem:[#allocation7 + $0x30] sm:$0xff] }
 0x5e4   :  { %1413 = vtanh.f32 %v2399_v57  ;;  %1123 = vmatpush.msrb.mxu3 %v2294_v9  ;;  %1176 = vmatpush.msrb.mxu0 %v2328_v5  ;;  %v1514_v5 = vld [vmem:[#allocation7 + $0x28] sm:$0xff] }
 0x5e6   :  { %1124 = vmatpush.msrb.mxu3 %v2298_v38  ;;  %1177 = vmatpush.msrb.mxu0 %v2333_v21  ;;  %v1515_v21 = vld [vmem:[#allocation7 + $0x20] sm:$0xff] }
 0x5e8   :  { %1125 = vmatpush.msrb.mxu3 %v1511_v2  ;;  %1178 = vmatpush.msrb.mxu0 %v2338_v23  ;;  %v1516_v23 = vld [vmem:[#allocation7 + $0x18] sm:$0xff] }
 0x5ea   :  { %v1414_v27 = vpop.eup %1413  ;;  %1126 = vmatpush.msrb.mxu3 %v1512_v51  ;;  %1179 = vmatpush.msrb.mxu0 %v2343_v24  ;;  %v1517_v24 = vld [vmem:[#allocation7 + $0x10] sm:$0xff] }
 0x5eb   :  { %v792_v61 = vmul.f32 %v1414_v27, %v787_v49 }
 0x5ec   :  { %1127 = vmatpush.msrb.mxu3 %v1513_v63  ;;  %1180 = vmatpush.msrb.mxu0 %v2347_v29 }
 0x5ed   :  { %882 = vmatmul.f32.vlgmr.msra.gmra.mxu1 %v792_v61 }
 0x5ee   :  { %1128 = vmatpush.msrb.mxu3 %v1514_v5  ;;  %1191 = vmatpush.msra.mxu1 %v2271_v37  ;;  %v1518_v37 = vld [vmem:[#allocation7 + $0x8] sm:$0xff] }
 0x5ef   :  { %1181 = vmatpush.msrb.mxu0 %v2350_v53 }
 0x5f0   :  { %1129 = vmatpush.msrb.mxu3 %v1515_v21  ;;  %1192 = vmatpush.msra.mxu1 %v2277_v45  ;;  %v1519_v45 = vld [vmem:[#allocation7] sm:$0xff] }
 0x5f1   :  { %1182 = vmatpush.msrb.mxu0 %v2353_v0 }
 0x5f2   :  { %1130 = vmatpush.msrb.mxu3 %v1516_v23  ;;  %1193 = vmatpush.msra.mxu1 %v2282_v46  ;;  %v176_v46 = vadd.f32 %v2371_v31, %v2147_v12 }
 0x5f3   :  { %1183 = vmatpush.msrb.mxu0 %v2356_v25 }
 0x5f4   :  { %1131 = vmatpush.msrb.mxu3 %v1517_v24  ;;  %1194 = vmatpush.msra.mxu1 %v2286_v34 }
 0x5f5   :  { %1184 = vmatpush.msrb.mxu0 %v2359_v3 }
 0x5f6   :  { %1132 = vmatpush.msrb.mxu3 %v1518_v37  ;;  %1195 = vmatpush.msra.mxu1 %v2290_v22 }
 0x5f7   :  { %1185 = vmatpush.msrb.mxu0 %v2362_v26 }
 0x5f8   :  { %1133 = vmatpush.msrb.mxu3 %v1519_v45  ;;  %1196 = vmatpush.msra.mxu1 %v2294_v9 }
 0x5f9   :  { %1186 = vmatpush.msrb.mxu0 %v2365_v28 }
 0x5fa   :  { %1197 = vmatpush.msra.mxu1 %v2298_v38  ;;  %v2429_v38 = vld [vmem:[%s2508_s6] ss:$0 sm:$0xff] }
 0x5fc   :  { %1198 = vmatpush.msra.mxu1 %v1511_v2 }
 0x5fe   :  { %1199 = vmatpush.msra.mxu1 %v1512_v51 }
 0x600   :  { %1200 = vmatpush.msra.mxu1 %v1513_v63 }
 0x602   :  { %1201 = vmatpush.msra.mxu1 %v1514_v5 }
 0x604   :  { %1202 = vmatpush.msra.mxu1 %v1515_v21  ;;  %v179_v21 = vadd.f32 %v2371_v31, %v2149_v13 }
 0x606   :  { %1203 = vmatpush.msra.mxu1 %v1516_v23 }
 0x608   :  { %1204 = vmatpush.msra.mxu1 %v1517_v24 }
 0x60a   :  { %1205 = vmatpush.msra.mxu1 %v1518_v37 }
 0x60c   :  { %1206 = vmatpush.msra.mxu1 %v1519_v45 }
 0x656   :  { %v863_v9 = vpop.f32.mrf.mxu0 }
 0x657   :  { %v864_v25 = vadd.f32 %v2429_v38, %v863_v9 }
 0x65c   :  { %v810_v34 = vpop.f32.mrf.mxu3 }
 0x65d   :  { %v813_v22 = vadd.f32 %v810_v34, %v176_v46 }
 0x65f   :  { %v1322_v29 = vmul.f32 -1.442695, %v813_v22 }
 0x661   :  { %1415 = vpow2.f32 %v1322_v29 }
 0x667   :  { %v1416_v53 = vpop.eup %1415 }
 0x668   :  { %v818_v0 = vadd.f32 1.0, %v1416_v53 }
 0x66a   :  { %1417 = vrcp.f32 %v818_v0  ;;  %v883_v3 = vpop.f32.mrf.mxu1  ;;  %v830_v59 = vand.u32 2147483648, %v818_v0  ;;  %v828_v44 = vand.u32 2147483647, %v818_v0  ;;  %vm824_vm12 = vweird.f32 %v818_v0 }
 0x66b   :  { %v886_v26 = vadd.f32 %v883_v3, %v864_v25 }
 0x66c   :  { %v831_v39 = vor.u32 1.1754944e-38, %v830_v59  ;;  %vm829_vm14 = vcmp.eq.f32.partialorder %v828_v44, 8.507059e+37 }
 0x66d   :  { %v1323_v28 = vmul.f32 -1.442695, %v886_v26 }
 0x66f   :  { %1419 = vpow2.f32 %v1323_v28 }
 0x670   :  { %v1418_v12 = vpop.eup %1417  ;;  %1421 = vtanh.f32 %v813_v22 }
 0x671   :  { %v820_v11 = vmul.f32 %v1418_v12, %v818_v0  ;;  %vm825_vm11 = vweird.f32 %v1418_v12 }
 0x672   :  { %vm826_vm13 = vmor %vm824_vm12, %vm825_vm11 }
 0x673   :  { %v821_v58 = vsub.f32 1.0, %v820_v11 }
 0x675   :  { %v1420_v60 = vpop.eup %1419  ;;  %v822_v18 = vmul.f32 %v1418_v12, %v821_v58 }
 0x676   :  { %v891_v20 = vadd.f32 1.0, %v1420_v60  ;;  %v1422_v42 = vpop.eup %1421 }
 0x677   :  { %v823_v62 = vadd.f32 %v1418_v12, %v822_v18 }
 0x678   :  { %1423 = vrcp.f32 %v891_v20  ;;  %v903_v30 = vand.u32 2147483648, %v891_v20  ;;  %v901_v4 = vand.u32 2147483647, %v891_v20  ;;  %vm897_vm0 = vweird.f32 %v891_v20 }
 0x679   :  { %v827_v6 = vsel %vm826_vm13, %v1418_v12, %v823_v62  ;;  %1425 = vtanh.f32 %v886_v26 }
 0x67a   :  { %v832_v8 = vsel %vm829_vm14, %v831_v39, %v827_v6  ;;  %v904_v48 = vor.u32 1.1754944e-38, %v903_v30  ;;  %vm902_vm2 = vcmp.eq.f32.partialorder %v901_v4, 8.507059e+37 }
 0x67b   :  { %v834_v35 = vsel %vm1835_vm5, %v1422_v42, %v832_v8 }
 0x67c   :  { %837 = vrot.lane.b32.xlu1 %v834_v35, %s1658_s13  ;;  %835 = vrot.lane.b32.xlu0 %v834_v35, %s1657_s12 }
 0x67e   :  { %v1424_v10 = vpop.eup %1423 }
 0x67f   :  { %v893_v15 = vmul.f32 %v1424_v10, %v891_v20  ;;  %vm898_vm15 = vweird.f32 %v1424_v10  ;;  %v1426_v52 = vpop.eup %1425 }
 0x680   :  { %vm899_vm1 = vmor %vm897_vm0, %vm898_vm15 }
 0x681   :  { %v894_v19 = vsub.f32 1.0, %v893_v15 }
 0x683   :  { %v895_v7 = vmul.f32 %v1424_v10, %v894_v19 }
 0x684   :  { %839 = vrot.lane.b32.xlu1 %v834_v35, %s1656_s11 }
 0x685   :  { %v896_v32 = vadd.f32 %v1424_v10, %v895_v7 }
 0x687   :  { %v900_v50 = vsel %vm899_vm1, %v1424_v10, %v896_v32 }
 0x688   :  { %v905_v54 = vsel %vm902_vm2, %v904_v48, %v900_v50 }
 0x689   :  { %v907_v17 = vsel %vm1835_vm5, %v1426_v52, %v905_v54 }
 0x68a   :  { %910 = vrot.lane.b32.xlu0 %v907_v17, %s1658_s13  ;;  %908 = vrot.lane.b32.xlu2 %v907_v17, %s1657_s12 }
 0x692   :  { %912 = vrot.lane.b32.xlu2 %v907_v17, %s1656_s11 }
 0x6e4   :  { %v909_v56 = vpop.permute.xlu2 %908 }
 0x6e5   :  { %v914_v49 = vmul.f32 %v909_v56, %v2399_v57 }
 0x6ee   :  { %v838_v16 = vpop.permute.xlu1 %837  ;;  %v836_v43 = vpop.permute.xlu0 %835 }
 0x6ef   :  { %v842_v47 = vmul.f32 %v838_v16, %v834_v35  ;;  %v841_v36 = vmul.f32 %v836_v43, %v2387_v33  ;;  %v913_v33 = vpop.permute.xlu2 %912 }
 0x6f1   :  { %v2443_v40 = vadd.f32 %v842_v47, %v841_v36 }
 0x6f3   :  { %1427 = vtanh.f32 %v2443_v40 }
 0x6f6   :  { %v840_v55 = vpop.permute.xlu1 %839 }
 0x6f9   :  { %v1428_v1 = vpop.eup %1427 }
 0x6fa   :  { %v845_v2 = vmul.f32 %v1428_v1, %v840_v55 }
 0x6fc   :  { %935 = vmatmul.f32.vlgmr.msra.gmra.mxu2 %v845_v2  ;;  %988 = vmatmul.f32.vlgmr.msra.gmra.mxu3 %v845_v2  ;;  %v911_v27 = vpop.permute.xlu0 %910 }
 0x6fd   :  { %v915_v51 = vmul.f32 %v911_v27, %v907_v17  ;;  %v182_v27 = vadd.f32 %v2371_v31, %v2151_v14 }
 0x6ff   :  { %v2447_v61 = vadd.f32 %v915_v51, %v914_v49 }
 0x701   :  { %1429 = vtanh.f32 %v2447_v61 }
 0x707   :  { %v1430_v63 = vpop.eup %1429 }
 0x708   :  { %v918_v5 = vmul.f32 %v1430_v63, %v913_v33 }
 0x70a   :  { %1008 = vmatmul.f32.vlgmr.msra.gmra.mxu0 %v918_v5 }
 0x77f   :  { %v936_v23 = vpop.f32.mrf.mxu2  ;;  %v989_v45 = vpop.f32.mrf.mxu3 }
 0x780   :  { %v939_v24 = vadd.f32 %v936_v23, %v179_v21  ;;  %v990_v46 = vadd.f32 %v2429_v38, %v989_v45 }
 0x782   :  { %v1324_v37 = vmul.f32 -1.442695, %v939_v24 }
 0x784   :  { %1431 = vpow2.f32 %v1324_v37 }
 0x787   :  { %v1009_v57 = vpop.f32.mrf.mxu0 }
 0x788   :  { %v1012_v34 = vadd.f32 %v1009_v57, %v990_v46 }
 0x78a   :  { %v1432_v22 = vpop.eup %1431  ;;  %v1325_v29 = vmul.f32 -1.442695, %v1012_v34 }
 0x78b   :  { %v944_v9 = vadd.f32 1.0, %v1432_v22 }
 0x78c   :  { %1433 = vpow2.f32 %v1325_v29 }
 0x78d   :  { %1435 = vrcp.f32 %v944_v9  ;;  %v956_v26 = vand.u32 2147483648, %v944_v9  ;;  %v954_v12 = vand.u32 2147483647, %v944_v9  ;;  %vm950_vm4 = vweird.f32 %v944_v9 }
 0x78f   :  { %v957_v59 = vor.u32 1.1754944e-38, %v956_v26  ;;  %vm955_vm7 = vcmp.eq.f32.partialorder %v954_v12, 8.507059e+37 }
 0x792   :  { %v1434_v53 = vpop.eup %1433 }
 0x793   :  { %v1436_v0 = vpop.eup %1435  ;;  %v1017_v25 = vadd.f32 1.0, %v1434_v53 }
 0x794   :  { %v946_v3 = vmul.f32 %v1436_v0, %v944_v9  ;;  %vm951_vm3 = vweird.f32 %v1436_v0 }
 0x795   :  { %1437 = vrcp.f32 %v1017_v25  ;;  %vm952_vm6 = vmor %vm950_vm4, %vm951_vm3  ;;  %v1029_v6 = vand.u32 2147483648, %v1017_v25  ;;  %v1027_v8 = vand.u32 2147483647, %v1017_v25  ;;  %vm1023_vm9 = vweird.f32 %v1017_v25 }
 0x796   :  { %v947_v13 = vsub.f32 1.0, %v946_v3  ;;  %1439 = vtanh.f32 %v939_v24 }
 0x797   :  { %1441 = vtanh.f32 %v1012_v34  ;;  %v1030_v10 = vor.u32 1.1754944e-38, %v1029_v6  ;;  %vm1028_vm11 = vcmp.eq.f32.partialorder %v1027_v8, 8.507059e+37 }
 0x798   :  { %v948_v28 = vmul.f32 %v1436_v0, %v947_v13 }
 0x79a   :  { %v949_v11 = vadd.f32 %v1436_v0, %v948_v28 }
 0x79b   :  { %v1438_v58 = vpop.eup %1437 }
 0x79c   :  { %v953_v60 = vsel %vm952_vm6, %v1436_v0, %v949_v11  ;;  %v1019_v18 = vmul.f32 %v1438_v58, %v1017_v25  ;;  %v1440_v44 = vpop.eup %1439  ;;  %vm1024_vm8 = vweird.f32 %v1438_v58 }
 0x79d   :  { %v958_v20 = vsel %vm955_vm7, %v957_v59, %v953_v60  ;;  %vm1025_vm10 = vmor %vm1023_vm9, %vm1024_vm8  ;;  %v1442_v19 = vpop.eup %1441 }
 0x79e   :  { %v960_v62 = vsel %vm1835_vm5, %v1440_v44, %v958_v20  ;;  %v1020_v39 = vsub.f32 1.0, %v1019_v18 }
 0x79f   :  { %963 = vrot.lane.b32.xlu1 %v960_v62, %s1658_s13  ;;  %961 = vrot.lane.b32.xlu0 %v960_v62, %s1657_s12 }
 0x7a0   :  { %v1021_v42 = vmul.f32 %v1438_v58, %v1020_v39 }
 0x7a2   :  { %v1022_v35 = vadd.f32 %v1438_v58, %v1021_v42 }
 0x7a4   :  { %v1026_v15 = vsel %vm1025_vm10, %v1438_v58, %v1022_v35 }
 0x7a5   :  { %v1031_v30 = vsel %vm1028_vm11, %v1030_v10, %v1026_v15 }
 0x7a6   :  { %v1033_v7 = vsel %vm1835_vm5, %v1442_v19, %v1031_v30 }
 0x7a7   :  { %965 = vrot.lane.b32.xlu1 %v960_v62, %s1656_s11  ;;  %1036 = vrot.lane.b32.xlu0 %v1033_v7, %s1658_s13 }
 0x7a8   :  { %1034 = vrot.lane.b32.xlu2 %v1033_v7, %s1657_s12 }
 0x7b0   :  { %1038 = vrot.lane.b32.xlu2 %v1033_v7, %s1656_s11 }
 0x802   :  { %v1035_v54 = vpop.permute.xlu2 %1034 }
 0x803   :  { %v1040_v16 = vmul.f32 %v1035_v54, %v2447_v61 }
 0x811   :  { %v964_v4 = vpop.permute.xlu1 %963  ;;  %v962_v32 = vpop.permute.xlu0 %961 }
 0x812   :  { %v968_v48 = vmul.f32 %v964_v4, %v960_v62  ;;  %v967_v50 = vmul.f32 %v962_v32, %v2443_v40  ;;  %v1039_v40 = vpop.permute.xlu2 %1038 }
 0x814   :  { %v2464_v52 = vadd.f32 %v968_v48, %v967_v50 }
 0x816   :  { %1443 = vtanh.f32 %v2464_v52 }
 0x819   :  { %v1037_v17 = vpop.permute.xlu0 %1036  ;;  %v966_v36 = vpop.permute.xlu1 %965 }
 0x81a   :  { %v1041_v43 = vmul.f32 %v1037_v17, %v1033_v7 }
 0x81c   :  { %v1444_v47 = vpop.eup %1443  ;;  %v2468_v1 = vadd.f32 %v1041_v43, %v1040_v16 }
 0x81d   :  { %v971_v55 = vmul.f32 %v1444_v47, %v966_v36 }
 0x81e   :  { %1445 = vtanh.f32 %v2468_v1 }
 0x81f   :  { %1061 = vmatmul.f32.vlgmr.msrb.gmra.mxu1 %v971_v55  ;;  %1114 = vmatmul.f32.vlgmr.msrb.gmra.mxu2 %v971_v55 }
 0x824   :  { %v1446_v56 = vpop.eup %1445 }
 0x825   :  { %v1044_v2 = vmul.f32 %v1446_v56, %v1039_v40 }
 0x827   :  { %1134 = vmatmul.f32.vlgmr.msrb.gmra.mxu3 %v1044_v2 }
 0x89c   :  { %v1062_v49 = vpop.f32.mrf.mxu1 }
 0x89d   :  { %v1065_v51 = vadd.f32 %v1062_v49, %v182_v27 }
 0x89f   :  { %v1326_v61 = vmul.f32 -1.442695, %v1065_v51 }
 0x8a1   :  { %1447 = vpow2.f32 %v1326_v61 }
 0x8a2   :  { %v1115_v63 = vpop.f32.mrf.mxu2 }
 0x8a3   :  { %v1116_v21 = vadd.f32 %v2429_v38, %v1115_v63 }
 0x8a7   :  { %v1448_v33 = vpop.eup %1447 }
 0x8a8   :  { %v1070_v5 = vadd.f32 1.0, %v1448_v33 }
 0x8aa   :  { %1449 = vrcp.f32 %v1070_v5  ;;  %v1135_v23 = vpop.f32.mrf.mxu3  ;;  %v1082_v34 = vand.u32 2147483648, %v1070_v5  ;;  %v1080_v22 = vand.u32 2147483647, %v1070_v5  ;;  %vm1076_vm13 = vweird.f32 %v1070_v5 }
 0x8ab   :  { %v1138_v24 = vadd.f32 %v1135_v23, %v1116_v21 }
 0x8ac   :  { %v1083_v53 = vor.u32 1.1754944e-38, %v1082_v34  ;;  %vm1081_vm15 = vcmp.eq.f32.partialorder %v1080_v22, 8.507059e+37  ;;  %v1254_v34 = vld [vmem:[#allocation8 + $0x50] sm:$0xff] }
 0x8ad   :  { %v1327_v37 = vmul.f32 -1.442695, %v1138_v24  ;;  %v1250_v22 = vld [vmem:[#allocation8 + $0x30] sm:$0xff] }
 0x8af   :  { %1451 = vpow2.f32 %v1327_v37  ;;  %v1258_v37 = vld [vmem:[#allocation8 + $0x70] sm:$0xff] }
 0x8b0   :  { %v1450_v45 = vpop.eup %1449  ;;  %1453 = vtanh.f32 %v1065_v51 }
 0x8b1   :  { %v1072_v46 = vmul.f32 %v1450_v45, %v1070_v5  ;;  %vm1077_vm12 = vweird.f32 %v1450_v45 }
 0x8b2   :  { %vm1078_vm14 = vmor %vm1076_vm13, %vm1077_vm12 }
 0x8b3   :  { %v1073_v57 = vsub.f32 1.0, %v1072_v46  ;;  %v1256_v46 = vld [vmem:[#allocation8 + $0x60] sm:$0xff] }
 0x8b5   :  { %v1452_v14 = vpop.eup %1451  ;;  %v1074_v31 = vmul.f32 %v1450_v45, %v1073_v57  ;;  %v1255_v57 = vld [vmem:[#allocation8 + $0x58] sm:$0xff] }
 0x8b6   :  { %v1143_v29 = vadd.f32 1.0, %v1452_v14  ;;  %v1454_v25 = vpop.eup %1453  ;;  %v1253_v14 = vld [vmem:[#allocation8 + $0x48] sm:$0xff] }
 0x8b7   :  { %v1075_v9 = vadd.f32 %v1450_v45, %v1074_v31  ;;  %v1251_v31 = vld [vmem:[#allocation8 + $0x38] sm:$0xff] }
 0x8b8   :  { %1455 = vrcp.f32 %v1143_v29  ;;  %v1155_v11 = vand.u32 2147483648, %v1143_v29  ;;  %v1153_v59 = vand.u32 2147483647, %v1143_v29  ;;  %vm1149_vm1 = vweird.f32 %v1143_v29 }
 0x8b9   :  { %v1079_v0 = vsel %vm1078_vm14, %v1450_v45, %v1075_v9  ;;  %1457 = vtanh.f32 %v1138_v24  ;;  %v1259_v24 = vld [vmem:[#allocation8 + $0x78] sm:$0xff]  ;;  %v1257_v45 = vld [vmem:[#allocation8 + $0x68] sm:$0xff]  ;;  %v1248_v9 = vld [vmem:[#allocation8 + $0x20] sm:$0xff] }
 0x8ba   :  { %v1084_v3 = vsel %vm1081_vm15, %v1083_v53, %v1079_v0  ;;  %v1156_v18 = vor.u32 1.1754944e-38, %v1155_v11  ;;  %vm1154_vm3 = vcmp.eq.f32.partialorder %v1153_v59, 8.507059e+37  ;;  %1264 = vmatpush.msra.mxu2 %v1259_v24  ;;  %v1247_v53 = vld [vmem:[#allocation8 + $0x18] sm:$0xff]  ;;  %v1246_v0 = vld [vmem:[#allocation8 + $0x10] sm:$0xff] }
 0x8bb   :  { %v1086_v13 = vsel %vm1835_vm5, %v1454_v25, %v1084_v3  ;;  %v1245_v25 = vld [vmem:[#allocation8 + $0x8] sm:$0xff]  ;;  %v1244_v3 = vld [vmem:[#allocation8] sm:$0xff] }
 0x8bc   :  { %1089 = vrot.lane.b32.xlu1 %v1086_v13, %s1658_s13  ;;  %1087 = vrot.lane.b32.xlu0 %v1086_v13, %s1657_s12 }
 0x8bd   :  { %1265 = vmatpush.msra.mxu2 %v1258_v37 }
 0x8be   :  { %v1456_v26 = vpop.eup %1455 }
 0x8bf   :  { %v1145_v28 = vmul.f32 %v1456_v26, %v1143_v29  ;;  %vm1150_vm0 = vweird.f32 %v1456_v26  ;;  %v1458_v20 = vpop.eup %1457  ;;  %1266 = vmatpush.msra.mxu2 %v1257_v45  ;;  %v1249_v29 = vld [vmem:[#allocation8 + $0x28] sm:$0xff] }
 0x8c0   :  { %vm1151_vm2 = vmor %vm1149_vm1, %vm1150_vm0 }
 0x8c1   :  { %v1146_v12 = vsub.f32 1.0, %v1145_v28  ;;  %1267 = vmatpush.msra.mxu2 %v1256_v46 }
 0x8c3   :  { %v1147_v58 = vmul.f32 %v1456_v26, %v1146_v12  ;;  %1268 = vmatpush.msra.mxu2 %v1255_v57 }
 0x8c4   :  { %1091 = vrot.lane.b32.xlu1 %v1086_v13, %s1656_s11 }
 0x8c5   :  { %v1148_v60 = vadd.f32 %v1456_v26, %v1147_v58  ;;  %1269 = vmatpush.msra.mxu2 %v1254_v34 }
 0x8c7   :  { %v1152_v44 = vsel %vm1151_vm2, %v1456_v26, %v1148_v60  ;;  %1270 = vmatpush.msra.mxu2 %v1253_v14 }
 0x8c8   :  { %v1157_v62 = vsel %vm1154_vm3, %v1156_v18, %v1152_v44  ;;  %v1342_v18 = vld [vmem:[%s2510_s8] ss:$0 sm:$0xff] }
 0x8c9   :  { %v1159_v39 = vsel %vm1835_vm5, %v1458_v20, %v1157_v62  ;;  %1271 = vmatpush.msra.mxu2 %v1252_v41 }
 0x8ca   :  { %1162 = vrot.lane.b32.xlu0 %v1159_v39, %s1658_s13  ;;  %1160 = vrot.lane.b32.xlu2 %v1159_v39, %s1657_s12 }
 0x8cb   :  { %1272 = vmatpush.msra.mxu2 %v1251_v31 }
 0x8cd   :  { %1273 = vmatpush.msra.mxu2 %v1250_v22 }
 0x8cf   :  { %1274 = vmatpush.msra.mxu2 %v1249_v29 }
 0x8d1   :  { %1275 = vmatpush.msra.mxu2 %v1248_v9 }
 0x8d2   :  { %1164 = vrot.lane.b32.xlu2 %v1159_v39, %s1656_s11 }
 0x8d3   :  { %1276 = vmatpush.msra.mxu2 %v1247_v53 }
 0x8d5   :  { %1277 = vmatpush.msra.mxu2 %v1246_v0 }
 0x8d7   :  { %1278 = vmatpush.msra.mxu2 %v1245_v25 }
 0x8d9   :  { %1279 = vmatpush.msra.mxu2 %v1244_v3 }
 0x924   :  { %v1161_v30 = vpop.permute.xlu2 %1160 }
 0x925   :  { %v1166_v32 = vmul.f32 %v1161_v30, %v2468_v1 }
 0x92c   :  { %v1165_v17 = vpop.permute.xlu2 %1164 }
 0x92e   :  { %v1090_v6 = vpop.permute.xlu1 %1089  ;;  %v1088_v42 = vpop.permute.xlu0 %1087 }
 0x92f   :  { %v1094_v8 = vmul.f32 %v1090_v6, %v1086_v13  ;;  %v1093_v35 = vmul.f32 %v1088_v42, %v2464_v52 }
 0x931   :  { %v1095_v10 = vadd.f32 %v1094_v8, %v1093_v35 }
 0x933   :  { %1459 = vtanh.f32 %v1095_v10 }
 0x936   :  { %v1092_v19 = vpop.permute.xlu1 %1091 }
 0x939   :  { %v1460_v15 = vpop.eup %1459 }
 0x93a   :  { %v1097_v7 = vmul.f32 %v1460_v15, %v1092_v19 }
 0x93c   :  { %1187 = vmatmul.f32.vlgmr.msrb.gmra.mxu0 %v1097_v7  ;;  %v1163_v4 = vpop.permute.xlu0 %1162 }
 0x93d   :  { %v1167_v48 = vmul.f32 %v1163_v4, %v1159_v39 }
 0x93f   :  { %v2486_v50 = vadd.f32 %v1167_v48, %v1166_v32 }
 0x941   :  { %1461 = vtanh.f32 %v2486_v50 }
 0x947   :  { %v1462_v54 = vpop.eup %1461 }
 0x948   :  { %v1170_v16 = vmul.f32 %v1462_v54, %v1165_v17 }
 0x94a   :  { %1207 = vmatmul.f32.vlgmr.msra.gmra.mxu1 %v1170_v16 }
 0x9b9   :  { %v1188_v52 = vpop.f32.mrf.mxu0 }
 0x9ba   :  { %v1189_v43 = vadd.f32 %v2429_v38, %v1188_v52 }
 0x9c7   :  { %v1208_v47 = vpop.f32.mrf.mxu1 }
 0x9c8   :  { %v1211_v36 = vadd.f32 %v1208_v47, %v1189_v43 }
 0x9ca   :  { %v1328_v55 = vmul.f32 -1.442695, %v1211_v36 }
 0x9cc   :  { %1463 = vpow2.f32 %v1328_v55 }
 0x9d2   :  { %v1464_v56 = vpop.eup %1463 }
 0x9d3   :  { %v1216_v40 = vadd.f32 1.0, %v1464_v56 }
 0x9d5   :  { %1465 = vrcp.f32 %v1216_v40  ;;  %v1228_v49 = vand.u32 2147483648, %v1216_v40  ;;  %v1226_v61 = vand.u32 2147483647, %v1216_v40  ;;  %vm1222_vm6 = vweird.f32 %v1216_v40 }
 0x9d6   :  { %1467 = vtanh.f32 %v1211_v36 }
 0x9d7   :  { %v1229_v33 = vor.u32 1.1754944e-38, %v1228_v49  ;;  %vm1227_vm8 = vcmp.eq.f32.partialorder %v1226_v61, 8.507059e+37 }
 0x9db   :  { %v1466_v1 = vpop.eup %1465 }
 0x9dc   :  { %v1218_v2 = vmul.f32 %v1466_v1, %v1216_v40  ;;  %vm1223_vm4 = vweird.f32 %v1466_v1  ;;  %v1468_v5 = vpop.eup %1467 }
 0x9dd   :  { %vm1224_vm7 = vmor %vm1222_vm6, %vm1223_vm4 }
 0x9de   :  { %v1219_v27 = vsub.f32 1.0, %v1218_v2 }
 0x9e0   :  { %v1220_v51 = vmul.f32 %v1466_v1, %v1219_v27 }
 0x9e2   :  { %v1221_v63 = vadd.f32 %v1466_v1, %v1220_v51 }
 0x9e4   :  { %v1225_v38 = vsel %vm1224_vm7, %v1466_v1, %v1221_v63 }
 0x9e5   :  { %v1230_v21 = vsel %vm1227_vm8, %v1229_v33, %v1225_v38 }
 0x9e6   :  { %v1232_v23 = vsel %vm1835_vm5, %v1468_v5, %v1230_v21 }
 0x9e7   :  { %1237 = vrot.lane.b32.xlu2 %v1232_v23, %s1656_s11  ;;  %1235 = vrot.lane.b32.xlu1 %v1232_v23, %s1658_s13  ;;  %s1292_s11 = sshll.u32 %s2511_s9, 4  ;;  %s1293_s11 = int_to_ptr.hbm [resolvable:$true] %s1292_s11 }
 0x9e8   :  { %1233 = vrot.lane.b32.xlu0 %v1232_v23, %s1657_s12 }
 0xa41   :  { %v1238_v59 = vpop.permute.xlu2 %1237 }
 0xa59   :  { %v1236_v13 = vpop.permute.xlu1 %1235 }
 0xa5a   :  { %v1240_v26 = vmul.f32 %v1236_v13, %v1232_v23  ;;  %v1234_v28 = vpop.permute.xlu0 %1233 }
 0xa5b   :  { %v1239_v12 = vmul.f32 %v1234_v28, %v2486_v50 }
 0xa5d   :  { %v1241_v11 = vadd.f32 %v1240_v26, %v1239_v12 }
 0xa5f   :  { %1469 = vtanh.f32 %v1241_v11 }
 0xa65   :  { %v1470_v58 = vpop.eup %1469 }
 0xa66   :  { %v1243_v60 = vmul.f32 %v1470_v58, %v1238_v59 }
 0xa68   :  { %1280 = vmatmul.f32.vlgmr.msra.gmra.mxu2 %v1243_v60 }
 0xaeb   :  { %v1281_v44 = vpop.f32.mrf.mxu2 }
 0xaec   :  { %v1282_v20 = vadd.f32 %v1342_v18, %v1281_v44 }
 0xaee   :  { %1284 = vst [vmem:[#allocation10] sm:$0xff] %v1282_v20 }
 0xaef   :  { %1295 = dma.vmem_to_hbm [thread:$0]  %s1291_s30, 128, %s1293_s11, [#allocation4]  }
 0xaf0   :  { %1647 = dma.done.wait [#allocation4], 128  }
 0xaf1   :  { %1648 = vsyncadd [#allocation4], 4294967168 }
 0xaf2   :  { %1300 = vsyncpa [#allocation3], 1 }
 0xaf3   :  { %1301 = vsyncpa [#allocation6], 1 }
 0xaf4   :  { %1302 = vsyncpa [#allocation9], 1 }
 0xaf5   :  { %1303 = vsyncpa [#allocation4], 1 }

</bundles_post_ra>
